<compile_context>
chip_gen: v5e
topology: v5e:2x2
jax: 0.10.0
libtpu: 0.0.40
codegen_flags: <defaults>
</compile_context>

<pallas_src>
import jax
import jax.numpy as jnp
from jax import lax
from jax.experimental import pallas as pl
from jax.experimental.pallas import tpu as pltpu


def gine_conv_kernel(eps_ref,                         # scalar prefetch (SMEM), shape (1,)
                     h_src_ref, h_dst_ref,            # [TE, Hp] streamed edge features (cdt)
                     dst_ref,                         # [TE, 1] int32 dst indices (streamed)
                     x_ref,                           # [NB, Hp] f32 node features, this block
                     w1e_src_ref, w1e_dst_ref, b1e_ref,   # edge MLP layer 1 (split weights)
                     w2e_ref, b2e_ref,                    # edge MLP layer 2
                     w1n_ref, b1n_ref,                    # node MLP layer 1
                     w2n_ref, b2n_ref,                    # node MLP layer 2
                     out_ref):                        # [NB, Hp] f32: neigh accumulator -> output
    nb = pl.program_id(0)                             # node-block axis ("parallel")
    e = pl.program_id(1)                              # edge-tile axis ("arbitrary" reduction)
    cdt = w2e_ref.dtype                               # MXU operand dtype (bf16 or f32)
    TE = h_src_ref.shape[0]
    NB = out_ref.shape[0]

    @pl.when(e == 0)
    def _():
        out_ref[...] = jnp.zeros_like(out_ref)

    # apply_edge_func: Linear(2H -> H) -> ReLU -> Linear(H -> H)
    # cat([h_src, h_dst], 1) @ W1e == h_src @ W1e_src + h_dst @ W1e_dst
    z = (jnp.dot(h_src_ref[...], w1e_src_ref[...], preferred_element_type=jnp.float32)
         + jnp.dot(h_dst_ref[...], w1e_dst_ref[...], preferred_element_type=jnp.float32)
         + b1e_ref[...])
    z = jnp.maximum(z, 0.0)                                               # f32 activations
    m = jnp.dot(z.astype(cdt), w2e_ref[...],
                preferred_element_type=jnp.float32) + b2e_ref[...]        # [TE, Hp] f32

    # fn.sum('m','neigh'): scatter-add messages into this block's destination rows.
    # dst one-hot is built only now (bounded live range), only over [nb*NB, (nb+1)*NB),
    # directly in the compute dtype (0/1 exact in bf16). Padded edges carry an
    # out-of-range sentinel -> all-zero rows -> contribute nothing.
    node_iota = lax.broadcasted_iota(jnp.int32, (TE, NB), 1) + nb * NB    # [TE, NB]
    dst_oh = (node_iota == dst_ref[...]).astype(cdt)                      # [TE, NB]
    out_ref[...] += lax.dot_general(dst_oh, m.astype(cdt),
                                    (((0,), (0,)), ((), ())),
                                    preferred_element_type=jnp.float32)   # [NB, Hp] f32

    @pl.when(e == pl.num_programs(1) - 1)
    def _():
        eps1 = 1.0 + eps_ref[0]
        # Chunked epilogue: bounds peak live VMEM of the node MLP temporaries.
        epi = 512 if NB % 512 == 0 else (256 if NB % 256 == 0 else 128)
        epi = min(epi, NB)
        n_chunks = NB // epi

        def chunk_body(c, carry):
            r = pl.multiple_of(c * epi, epi)
            sl = pl.ds(r, epi)
            rst = eps1 * x_ref[sl, :] + out_ref[sl, :]                    # f32
            # apply_func: Linear(H -> H) -> ReLU -> Linear(H -> H)
            z2 = jnp.dot(rst.astype(cdt), w1n_ref[...],
                         preferred_element_type=jnp.float32) + b1n_ref[...]
            z2 = jnp.maximum(z2, 0.0)
            o = jnp.dot(z2.astype(cdt), w2n_ref[...],
                        preferred_element_type=jnp.float32) + b2n_ref[...]
            out_ref[sl, :] = o.astype(out_ref.dtype)
            return carry

        lax.fori_loop(0, n_chunks, chunk_body, 0)


def _round_up(x, m):
    return ((x + m - 1) // m) * m


def gine_conv(node_feat, src_idx, dst_idx, params, eps=0.0, *,
              edge_tile=256, num_node_blocks=1, compute_dtype=jnp.bfloat16):
    """GINEConv forward.

    node_feat: [N, H] float; src_idx / dst_idx: [E] int32 edge endpoints.
    compute_dtype: MXU operand dtype (bf16 recommended; accumulation is always f32).
    num_node_blocks: leading "parallel" grid axis (use 2 on v7x to engage both TCs).
    """
    N, H = node_feat.shape
    E = int(src_idx.shape[0])
    f32 = jnp.float32
    cdt = compute_dtype

    # Lane-dense / MXU-friendly padded sizes.
    Hp = _round_up(max(H, 128), 128)                        # hidden dim, lane-dense
    NB = _round_up(max(-(-N // num_node_blocks), 128), 128)  # node rows per block, 128-aligned
    N_pad = NB * num_node_blocks
    edge_tile = _round_up(max(edge_tile, 128), 128)
    E_pad = max(edge_tile, _round_up(E, edge_tile))         # >= 1 tile even if E == 0
    num_edge_tiles = E_pad // edge_tile

    # ---- Pad node features / parameters once (zeros keep pad lanes exactly 0). ----
    x = jnp.zeros((N_pad, Hp), f32).at[:N, :H].set(node_feat.astype(f32))

    def pad2(w, r, c, dt):
        return jnp.zeros((r, c), dt).at[:w.shape[0], :w.shape[1]].set(w.astype(dt))

    w1e = params["w1e"]                                     # [2H, H] -> split + pad + cast
    w1e_src = pad2(w1e[:H, :], Hp, Hp, cdt)
    w1e_dst = pad2(w1e[H:, :], Hp, Hp, cdt)
    w2e = pad2(params["w2e"], Hp, Hp, cdt)
    w1n = pad2(params["w1n"], Hp, Hp, cdt)
    w2n = pad2(params["w2n"], Hp, Hp, cdt)
    b1e = pad2(params["b1e"], 1, Hp, f32)                   # biases stay f32
    b2e = pad2(params["b2e"], 1, Hp, f32)
    b1n = pad2(params["b1n"], 1, Hp, f32)
    b2n = pad2(params["b2n"], 1, Hp, f32)

    # ---- Pre-gather per-edge endpoint features in the wrapper: O(E*Hp) HBM streaming
    # instead of O(E*N*Hp) one-hot matmuls in-kernel. Padded edges gather node 0 but
    # are dropped at the scatter by the out-of-range dst sentinel. ----
    src_ids = jnp.zeros((E_pad,), jnp.int32).at[:E].set(src_idx.astype(jnp.int32))
    dst_ids = jnp.zeros((E_pad,), jnp.int32).at[:E].set(dst_idx.astype(jnp.int32))
    h_src = x[src_ids].astype(cdt)                          # [E_pad, Hp]
    h_dst = x[dst_ids].astype(cdt)                          # [E_pad, Hp]
    sentinel = jnp.int32(N_pad)                             # matches no node block
    dst_p = jnp.full((E_pad, 1), sentinel, jnp.int32).at[:E, 0].set(dst_idx.astype(jnp.int32))

    eps_arr = jnp.asarray([eps], dtype=f32)

    edge_feat_spec = pl.BlockSpec((edge_tile, Hp), lambda nb, e, *_: (e, 0))
    edge_idx_spec = pl.BlockSpec((edge_tile, 1), lambda nb, e, *_: (e, 0))
    node_spec = pl.BlockSpec((NB, Hp), lambda nb, e, *_: (nb, 0))

    def resident(shape):
        # Constant index map -> fetched once, VMEM-resident across the whole grid.
        return pl.BlockSpec(shape, lambda nb, e, *_: (0,) * len(shape))

    grid_spec = pltpu.PrefetchScalarGridSpec(
        num_scalar_prefetch=1,                              # eps -> SMEM
        grid=(num_node_blocks, num_edge_tiles),
        in_specs=[
            edge_feat_spec, edge_feat_spec,                 # h_src / h_dst tiles (streamed)
            edge_idx_spec,                                  # dst index tile (streamed)
            node_spec,                                      # x rows for this node block
            resident((Hp, Hp)), resident((Hp, Hp)), resident((1, Hp)),   # edge MLP l1
            resident((Hp, Hp)), resident((1, Hp)),                       # edge MLP l2
            resident((Hp, Hp)), resident((1, Hp)),                       # node MLP l1
            resident((Hp, Hp)), resident((1, Hp)),                       # node MLP l2
        ],
        out_specs=node_spec,
    )

    # Generation-aware VMEM budget: ~3/4 of physical per-core VMEM
    # (~96 MiB on v5e/v6e's 128 MiB, ~48 MiB on v7x's 64 MiB).
    try:
        info = pltpu.get_tpu_info()
        vmem_cap = int(getattr(info, "vmem_capacity_bytes", 64 * 1024 * 1024))
    except Exception:
        vmem_cap = 64 * 1024 * 1024
    vmem_limit = max(32 * 1024 * 1024, (vmem_cap * 3) // 4)

    out_padded = pl.pallas_call(
        gine_conv_kernel,
        out_shape=jax.ShapeDtypeStruct((N_pad, Hp), f32),   # f32: doubles as accumulator
        grid_spec=grid_spec,
        compiler_params=pltpu.CompilerParams(
            dimension_semantics=("parallel", "arbitrary"),  # node blocks || , edge tiles = reduction
            vmem_limit_bytes=vmem_limit,
        ),
    )(eps_arr, h_src, h_dst, dst_p, x,
      w1e_src, w1e_dst, b1e, w2e, b2e, w1n, b1n, w2n, b2n)

    return out_padded[:N, :H].astype(node_feat.dtype)


def init_params(key, hidden):
    """Deterministic init mimicking PyTorch Linear default (uniform +-1/sqrt(fan_in))."""
    def lin(k, fan_in, fan_out):
        kw, kb = jax.random.split(k)
        bound = 1.0 / jnp.sqrt(jnp.float32(fan_in))
        w = jax.random.uniform(kw, (fan_in, fan_out), jnp.float32, -bound, bound)
        b = jax.random.uniform(kb, (1, fan_out), jnp.float32, -bound, bound)
        return w, b

    k1, k2, k3, k4 = jax.random.split(key, 4)
    w1e, b1e = lin(k1, 2 * hidden, hidden)   # apply_edge_func layer 1
    w2e, b2e = lin(k2, hidden, hidden)       # apply_edge_func layer 2
    w1n, b1n = lin(k3, hidden, hidden)       # apply_func layer 1
    w2n, b2n = lin(k4, hidden, hidden)       # apply_func layer 2
    return dict(w1e=w1e, b1e=b1e, w2e=w2e, b2e=b2e,
                w1n=w1n, b1n=b1n, w2n=w2n, b2n=b2n)


def gine_conv_ref(node_feat, src_idx, dst_idx, p, eps=0.0):
    """Pure-JAX (f32) reference for correctness."""
    h_src = node_feat[src_idx]
    h_dst = node_feat[dst_idx]
    edge_in = jnp.concatenate([h_src, h_dst], axis=1)
    z = jnp.maximum(edge_in @ p["w1e"] + p["b1e"], 0.0)
    m = z @ p["w2e"] + p["b2e"]
    neigh = jnp.zeros_like(node_feat).at[dst_idx].add(m)
    rst = (1.0 + eps) * node_feat + neigh
    z2 = jnp.maximum(rst @ p["w1n"] + p["b1n"], 0.0)
    return z2 @ p["w2n"] + p["b2n"]


if __name__ == "__main__":
    # Small but non-trivial graph: spans 2 node blocks and 5 edge tiles.
    N, H, E = 200, 32, 600
    key = jax.random.PRNGKey(0)
    k_feat, k_src, k_dst, k_par = jax.random.split(key, 4)

    node_feat = jax.random.normal(k_feat, (N, H), dtype=jnp.float32)
    src_idx = jax.random.randint(k_src, (E,), 0, N, dtype=jnp.int32)
    dst_idx = jax.random.randint(k_dst, (E,), 0, N, dtype=jnp.int32)
    params = init_params(k_par, H)

    ref = gine_conv_ref(node_feat, src_idx, dst_idx, params, eps=0.0)
    ref_eps = gine_conv_ref(node_feat, src_idx, dst_idx, params, eps=0.25)

    # 1) Exact-parity path: f32 MXU operands, multi edge-tile + 2 node blocks.
    out_f32 = jax.block_until_ready(
        gine_conv(node_feat, src_idx, dst_idx, params, eps=0.0,
                  edge_tile=128, num_node_blocks=2, compute_dtype=jnp.float32))
    assert out_f32.shape == (N, H)
    assert jnp.allclose(out_f32, ref, atol=1e-4, rtol=1e-4), "f32 mismatch (eps=0)"

    out_f32_eps = jax.block_until_ready(
        gine_conv(node_feat, src_idx, dst_idx, params, eps=0.25,
                  edge_tile=128, num_node_blocks=2, compute_dtype=jnp.float32))
    assert jnp.allclose(out_f32_eps, ref_eps, atol=1e-4, rtol=1e-4), "f32 mismatch (eps=0.25)"

    # 2) Fast path: bf16 MXU operands, f32 accumulation (mixed-precision tolerance).
    out_bf16 = jax.block_until_ready(
        gine_conv(node_feat, src_idx, dst_idx, params, eps=0.0,
                  edge_tile=128, num_node_blocks=2, compute_dtype=jnp.bfloat16))
    rel = float(jnp.linalg.norm(out_bf16 - ref) / jnp.linalg.norm(ref))
    assert rel < 3e-2, f"bf16 relative error too large: {rel}"

    # 3) E == 0 edge case: output must equal apply_func((1+eps)*h).
    empty = jnp.zeros((0,), jnp.int32)
    out_empty = jax.block_until_ready(
        gine_conv(node_feat, empty, empty, params, eps=0.5, compute_dtype=jnp.float32))
    ref_empty = gine_conv_ref(node_feat, empty, empty, params, eps=0.5)
    assert jnp.allclose(out_empty, ref_empty, atol=1e-4, rtol=1e-4), "empty-graph mismatch"

    print("KERNEL_OK")
</pallas_src>

<mosaic_0001>
module attributes {stable_mosaic.version = 11 : i64} {
  func.func @gine_conv_kernel(%arg0: i32, %arg1: i32, %arg2: memref<1xf32, #tpu.memory_space<smem>>, %arg3: memref<128x128xf32, #tpu.memory_space<vmem>>, %arg4: memref<128x128xf32, #tpu.memory_space<vmem>>, %arg5: memref<128x1xi32, #tpu.memory_space<vmem>>, %arg6: memref<128x128xf32, #tpu.memory_space<vmem>>, %arg7: memref<128x128xf32, #tpu.memory_space<vmem>>, %arg8: memref<128x128xf32, #tpu.memory_space<vmem>>, %arg9: memref<1x128xf32, #tpu.memory_space<vmem>>, %arg10: memref<128x128xf32, #tpu.memory_space<vmem>>, %arg11: memref<1x128xf32, #tpu.memory_space<vmem>>, %arg12: memref<128x128xf32, #tpu.memory_space<vmem>>, %arg13: memref<1x128xf32, #tpu.memory_space<vmem>>, %arg14: memref<128x128xf32, #tpu.memory_space<vmem>>, %arg15: memref<1x128xf32, #tpu.memory_space<vmem>>, %arg16: memref<128x128xf32, #tpu.memory_space<vmem>>) attributes {dimension_semantics = [#tpu.dimension_semantics<parallel>, #tpu.dimension_semantics<arbitrary>], iteration_bounds = array<i64: 2, 5>, scalar_prefetch = 1 : i64, scratch_operands = 0 : i64, tpu.core_type = #tpu.core_type<tc>, window_params = [{transform_indices = @transform_0, window_bounds = array<i64: 128, 128>}, {transform_indices = @transform_1, window_bounds = array<i64: 128, 128>}, {transform_indices = @transform_2, window_bounds = array<i64: 128, 1>}, {transform_indices = @transform_3, window_bounds = array<i64: 128, 128>}, {pipeline_mode = #tpu.pipeline_mode<synchronous>, transform_indices = @transform_4, window_bounds = array<i64: 128, 128>}, {pipeline_mode = #tpu.pipeline_mode<synchronous>, transform_indices = @transform_5, window_bounds = array<i64: 128, 128>}, {pipeline_mode = #tpu.pipeline_mode<synchronous>, transform_indices = @transform_6, window_bounds = array<i64: 1, 128>}, {pipeline_mode = #tpu.pipeline_mode<synchronous>, transform_indices = @transform_7, window_bounds = array<i64: 128, 128>}, {pipeline_mode = #tpu.pipeline_mode<synchronous>, transform_indices = @transform_8, window_bounds = array<i64: 1, 128>}, {pipeline_mode = #tpu.pipeline_mode<synchronous>, transform_indices = @transform_9, window_bounds = array<i64: 128, 128>}, {pipeline_mode = #tpu.pipeline_mode<synchronous>, transform_indices = @transform_10, window_bounds = array<i64: 1, 128>}, {pipeline_mode = #tpu.pipeline_mode<synchronous>, transform_indices = @transform_11, window_bounds = array<i64: 128, 128>}, {pipeline_mode = #tpu.pipeline_mode<synchronous>, transform_indices = @transform_12, window_bounds = array<i64: 1, 128>}, {transform_indices = @transform_13, window_bounds = array<i64: 128, 128>}]} {
    %c0_i32 = arith.constant 0 : i32
    %0 = arith.cmpi eq, %arg1, %c0_i32 : i32
    %1 = arith.extui %0 : i1 to i32
    %c0_i32_0 = arith.constant 0 : i32
    %2 = arith.cmpi ne, %1, %c0_i32_0 : i32
    scf.if %2 {
      %cst_25 = arith.constant 0.000000e+00 : f32
      %36 = vector.broadcast %cst_25 : f32 to vector<128x128xf32>
      %c0_26 = arith.constant 0 : index
      %c0_27 = arith.constant 0 : index
      %37 = vector.load %arg16[%c0_26, %c0_27] : memref<128x128xf32, #tpu.memory_space<vmem>>, vector<128x128xf32>
      tpu.vector_store %arg16[%c0_26, %c0_27], %36 {strides = array<i32>} : memref<128x128xf32, #tpu.memory_space<vmem>>, vector<128x128xf32>,
    } else {
    }
    %c0 = arith.constant 0 : index
    %c0_1 = arith.constant 0 : index
    %3 = vector.load %arg3[%c0, %c0_1] : memref<128x128xf32, #tpu.memory_space<vmem>>, vector<128x128xf32>
    %c0_2 = arith.constant 0 : index
    %c0_3 = arith.constant 0 : index
    %4 = vector.load %arg7[%c0_2, %c0_3] : memref<128x128xf32, #tpu.memory_space<vmem>>, vector<128x128xf32>
    %cst = arith.constant dense<0.000000e+00> : vector<128x128xf32>
    %5 = tpu.matmul %3, %4, %cst {dimension_numbers = #tpu.dot_dimension_numbers<[1], [0], [0], [1], [0, 0, 1, 1], [], []>} : vector<128x128xf32>, vector<128x128xf32>, vector<128x128xf32> -> vector<128x128xf32>
    %c0_4 = arith.constant 0 : index
    %c0_5 = arith.constant 0 : index
    %6 = vector.load %arg4[%c0_4, %c0_5] : memref<128x128xf32, #tpu.memory_space<vmem>>, vector<128x128xf32>
    %c0_6 = arith.constant 0 : index
    %c0_7 = arith.constant 0 : index
    %7 = vector.load %arg8[%c0_6, %c0_7] : memref<128x128xf32, #tpu.memory_space<vmem>>, vector<128x128xf32>
    %cst_8 = arith.constant dense<0.000000e+00> : vector<128x128xf32>
    %8 = tpu.matmul %6, %7, %cst_8 {dimension_numbers = #tpu.dot_dimension_numbers<[1], [0], [0], [1], [0, 0, 1, 1], [], []>} : vector<128x128xf32>, vector<128x128xf32>, vector<128x128xf32> -> vector<128x128xf32>
    %9 = arith.addf %5, %8 : vector<128x128xf32>
    %c0_9 = arith.constant 0 : index
    %c0_10 = arith.constant 0 : index
    %10 = vector.load %arg9[%c0_9, %c0_10] : memref<1x128xf32, #tpu.memory_space<vmem>>, vector<1x128xf32>
    %11 = vector.broadcast %10 : vector<1x128xf32> to vector<128x128xf32>
    %12 = arith.addf %9, %11 : vector<128x128xf32>
    %cst_11 = arith.constant 0.000000e+00 : f32
    %13 = vector.broadcast %cst_11 : f32 to vector<128x128xf32>
    %14 = arith.maximumf %12, %13 : vector<128x128xf32>
    %c0_12 = arith.constant 0 : index
    %c0_13 = arith.constant 0 : index
    %15 = vector.load %arg10[%c0_12, %c0_13] : memref<128x128xf32, #tpu.memory_space<vmem>>, vector<128x128xf32>
    %cst_14 = arith.constant dense<0.000000e+00> : vector<128x128xf32>
    %16 = tpu.matmul %14, %15, %cst_14 {dimension_numbers = #tpu.dot_dimension_numbers<[1], [0], [0], [1], [0, 0, 1, 1], [], []>} : vector<128x128xf32>, vector<128x128xf32>, vector<128x128xf32> -> vector<128x128xf32>
    %c0_15 = arith.constant 0 : index
    %c0_16 = arith.constant 0 : index
    %17 = vector.load %arg11[%c0_15, %c0_16] : memref<1x128xf32, #tpu.memory_space<vmem>>, vector<1x128xf32>
    %18 = vector.broadcast %17 : vector<1x128xf32> to vector<128x128xf32>
    %19 = arith.addf %16, %18 : vector<128x128xf32>
    %20 = tpu.iota {dimensions = array<i32: 1>} : vector<128x128xi32>
    %c128_i32 = arith.constant 128 : i32
    %21 = arith.muli %arg0, %c128_i32 : i32
    %22 = vector.broadcast %21 : i32 to vector<128x128xi32>
    %23 = arith.addi %20, %22 : vector<128x128xi32>
    %c0_17 = arith.constant 0 : index
    %c0_18 = arith.constant 0 : index
    %24 = vector.load %arg5[%c0_17, %c0_18] : memref<128x1xi32, #tpu.memory_space<vmem>>, vector<128x1xi32>
    %25 = vector.broadcast %24 : vector<128x1xi32> to vector<128x128xi32>
    %26 = arith.cmpi eq, %23, %25 : vector<128x128xi32>
    %27 = arith.extui %26 : vector<128x128xi1> to vector<128x128xi32>
    %28 = arith.sitofp %27 : vector<128x128xi32> to vector<128x128xf32>
    %c0_19 = arith.constant 0 : index
    %c0_20 = arith.constant 0 : index
    %29 = vector.load %arg16[%c0_19, %c0_20] : memref<128x128xf32, #tpu.memory_space<vmem>>, vector<128x128xf32>
    %cst_21 = arith.constant dense<0.000000e+00> : vector<128x128xf32>
    %30 = tpu.matmul %28, %19, %cst_21 {dimension_numbers = #tpu.dot_dimension_numbers<[0], [0], [1], [1], [0, 1, 1, 1], [], []>} : vector<128x128xf32>, vector<128x128xf32>, vector<128x128xf32> -> vector<128x128xf32>
    %31 = arith.addf %29, %30 : vector<128x128xf32>
    %c0_22 = arith.constant 0 : index
    %c0_23 = arith.constant 0 : index
    %32 = vector.load %arg16[%c0_22, %c0_23] : memref<128x128xf32, #tpu.memory_space<vmem>>, vector<128x128xf32>
    tpu.vector_store %arg16[%c0_22, %c0_23], %31 {strides = array<i32>} : memref<128x128xf32, #tpu.memory_space<vmem>>, vector<128x128xf32>,
    %c4_i32 = arith.constant 4 : i32
    %33 = arith.cmpi eq, %arg1, %c4_i32 : i32
    %34 = arith.extui %33 : i1 to i32
    %c0_i32_24 = arith.constant 0 : i32
    %35 = arith.cmpi ne, %34, %c0_i32_24 : i32
    scf.if %35 {
      %c0_25 = arith.constant 0 : index
      %36 = memref.load %arg2[%c0_25] : memref<1xf32, #tpu.memory_space<smem>>
      %cst_26 = arith.constant 1.000000e+00 : f32
      %37 = arith.addf %cst_26, %36 : f32
      %c0_i32_27 = arith.constant 0 : i32
      %c128_i32_28 = arith.constant 128 : i32
      %38 = arith.muli %c0_i32_27, %c128_i32_28 : i32
      %39 = tpu.assume_multiple %38, 128 : i32
      %40 = arith.index_cast %39 : i32 to index
      %c0_29 = arith.constant 0 : index
      %41 = vector.load %arg6[%40, %c0_29] : memref<128x128xf32, #tpu.memory_space<vmem>>, vector<128x128xf32>
      %42 = vector.broadcast %37 : f32 to vector<128x128xf32>
      %43 = arith.mulf %42, %41 : vector<128x128xf32>
      %44 = arith.index_cast %39 : i32 to index
      %c0_30 = arith.constant 0 : index
      %45 = vector.load %arg16[%44, %c0_30] : memref<128x128xf32, #tpu.memory_space<vmem>>, vector<128x128xf32>
      %46 = arith.addf %43, %45 : vector<128x128xf32>
      %c0_31 = arith.constant 0 : index
      %c0_32 = arith.constant 0 : index
      %47 = vector.load %arg12[%c0_31, %c0_32] : memref<128x128xf32, #tpu.memory_space<vmem>>, vector<128x128xf32>
      %cst_33 = arith.constant dense<0.000000e+00> : vector<128x128xf32>
      %48 = tpu.matmul %46, %47, %cst_33 {dimension_numbers = #tpu.dot_dimension_numbers<[1], [0], [0], [1], [0, 0, 1, 1], [], []>} : vector<128x128xf32>, vector<128x128xf32>, vector<128x128xf32> -> vector<128x128xf32>
      %c0_34 = arith.constant 0 : index
      %c0_35 = arith.constant 0 : index
      %49 = vector.load %arg13[%c0_34, %c0_35] : memref<1x128xf32, #tpu.memory_space<vmem>>, vector<1x128xf32>
      %50 = vector.broadcast %49 : vector<1x128xf32> to vector<128x128xf32>
      %51 = arith.addf %48, %50 : vector<128x128xf32>
      %cst_36 = arith.constant 0.000000e+00 : f32
      %52 = vector.broadcast %cst_36 : f32 to vector<128x128xf32>
      %53 = arith.maximumf %51, %52 : vector<128x128xf32>
      %c0_37 = arith.constant 0 : index
      %c0_38 = arith.constant 0 : index
      %54 = vector.load %arg14[%c0_37, %c0_38] : memref<128x128xf32, #tpu.memory_space<vmem>>, vector<128x128xf32>
      %cst_39 = arith.constant dense<0.000000e+00> : vector<128x128xf32>
      %55 = tpu.matmul %53, %54, %cst_39 {dimension_numbers = #tpu.dot_dimension_numbers<[1], [0], [0], [1], [0, 0, 1, 1], [], []>} : vector<128x128xf32>, vector<128x128xf32>, vector<128x128xf32> -> vector<128x128xf32>
      %c0_40 = arith.constant 0 : index
      %c0_41 = arith.constant 0 : index
      %56 = vector.load %arg15[%c0_40, %c0_41] : memref<1x128xf32, #tpu.memory_space<vmem>>, vector<1x128xf32>
      %57 = vector.broadcast %56 : vector<1x128xf32> to vector<128x128xf32>
      %58 = arith.addf %55, %57 : vector<128x128xf32>
      %59 = arith.index_cast %39 : i32 to index
      %c0_42 = arith.constant 0 : index
      %60 = vector.load %arg16[%59, %c0_42] : memref<128x128xf32, #tpu.memory_space<vmem>>, vector<128x128xf32>
      tpu.vector_store %arg16[%59, %c0_42], %58 {strides = array<i32>} : memref<128x128xf32, #tpu.memory_space<vmem>>, vector<128x128xf32>,
      %c1_i32 = arith.constant 1 : i32
    } else {
    }
    return
  }
  func.func @transform_0(%arg0: i32, %arg1: i32, %arg2: memref<1xf32, #tpu.memory_space<smem>>) -> (i32, i32) {
    %c0_i32 = arith.constant 0 : i32
    %c0_i32_0 = arith.constant 0 : i32
    return %arg1, %c0_i32 : i32, i32
  }
  func.func @transform_1(%arg0: i32, %arg1: i32, %arg2: memref<1xf32, #tpu.memory_space<smem>>) -> (i32, i32) {
    %c0_i32 = arith.constant 0 : i32
    %c0_i32_0 = arith.constant 0 : i32
    return %arg1, %c0_i32 : i32, i32
  }
  func.func @transform_2(%arg0: i32, %arg1: i32, %arg2: memref<1xf32, #tpu.memory_space<smem>>) -> (i32, i32) {
    %c0_i32 = arith.constant 0 : i32
    %c0_i32_0 = arith.constant 0 : i32
    return %arg1, %c0_i32 : i32, i32
  }
  func.func @transform_3(%arg0: i32, %arg1: i32, %arg2: memref<1xf32, #tpu.memory_space<smem>>) -> (i32, i32) {
    %c0_i32 = arith.constant 0 : i32
    %c0_i32_0 = arith.constant 0 : i32
    return %arg0, %c0_i32 : i32, i32
  }
  func.func @transform_4(%arg0: i32, %arg1: i32, %arg2: memref<1xf32, #tpu.memory_space<smem>>) -> (i32, i32) {
    %c0_i32 = arith.constant 0 : i32
    %c0_i32_0 = arith.constant 0 : i32
    %c0_i32_1 = arith.constant 0 : i32
    return %c0_i32, %c0_i32_0 : i32, i32
  }
  func.func @transform_5(%arg0: i32, %arg1: i32, %arg2: memref<1xf32, #tpu.memory_space<smem>>) -> (i32, i32) {
    %c0_i32 = arith.constant 0 : i32
    %c0_i32_0 = arith.constant 0 : i32
    %c0_i32_1 = arith.constant 0 : i32
    return %c0_i32, %c0_i32_0 : i32, i32
  }
  func.func @transform_6(%arg0: i32, %arg1: i32, %arg2: memref<1xf32, #tpu.memory_space<smem>>) -> (i32, i32) {
    %c0_i32 = arith.constant 0 : i32
    %c0_i32_0 = arith.constant 0 : i32
    %c0_i32_1 = arith.constant 0 : i32
    return %c0_i32, %c0_i32_0 : i32, i32
  }
  func.func @transform_7(%arg0: i32, %arg1: i32, %arg2: memref<1xf32, #tpu.memory_space<smem>>) -> (i32, i32) {
    %c0_i32 = arith.constant 0 : i32
    %c0_i32_0 = arith.constant 0 : i32
    %c0_i32_1 = arith.constant 0 : i32
    return %c0_i32, %c0_i32_0 : i32, i32
  }
  func.func @transform_8(%arg0: i32, %arg1: i32, %arg2: memref<1xf32, #tpu.memory_space<smem>>) -> (i32, i32) {
    %c0_i32 = arith.constant 0 : i32
    %c0_i32_0 = arith.constant 0 : i32
    %c0_i32_1 = arith.constant 0 : i32
    return %c0_i32, %c0_i32_0 : i32, i32
  }
  func.func @transform_9(%arg0: i32, %arg1: i32, %arg2: memref<1xf32, #tpu.memory_space<smem>>) -> (i32, i32) {
    %c0_i32 = arith.constant 0 : i32
    %c0_i32_0 = arith.constant 0 : i32
    %c0_i32_1 = arith.constant 0 : i32
    return %c0_i32, %c0_i32_0 : i32, i32
  }
  func.func @transform_10(%arg0: i32, %arg1: i32, %arg2: memref<1xf32, #tpu.memory_space<smem>>) -> (i32, i32) {
    %c0_i32 = arith.constant 0 : i32
    %c0_i32_0 = arith.constant 0 : i32
    %c0_i32_1 = arith.constant 0 : i32
    return %c0_i32, %c0_i32_0 : i32, i32
  }
  func.func @transform_11(%arg0: i32, %arg1: i32, %arg2: memref<1xf32, #tpu.memory_space<smem>>) -> (i32, i32) {
    %c0_i32 = arith.constant 0 : i32
    %c0_i32_0 = arith.constant 0 : i32
    %c0_i32_1 = arith.constant 0 : i32
    return %c0_i32, %c0_i32_0 : i32, i32
  }
  func.func @transform_12(%arg0: i32, %arg1: i32, %arg2: memref<1xf32, #tpu.memory_space<smem>>) -> (i32, i32) {
    %c0_i32 = arith.constant 0 : i32
    %c0_i32_0 = arith.constant 0 : i32
    %c0_i32_1 = arith.constant 0 : i32
    return %c0_i32, %c0_i32_0 : i32, i32
  }
  func.func @transform_13(%arg0: i32, %arg1: i32, %arg2: memref<1xf32, #tpu.memory_space<smem>>) -> (i32, i32) {
    %c0_i32 = arith.constant 0 : i32
    %c0_i32_0 = arith.constant 0 : i32
    return %arg0, %c0_i32 : i32, i32
  }
}

</mosaic_0001>

<bundles_post_ra>
// kernel: tpu_custom_call.1
= control target key start
LH: loop header
LB: loop body
LE: loop exit
PB: predicated region body
PF: predicated region fallthrough
CT: control target
= control target key end

     0   :  { %s2951_s0 = inlined_call_operand.<no memory space> [shape: f32[1], index: 0, kind: input, shape index: {}]   ;;  %s2952_s1 = inlined_call_operand.vmem [shape: f32[640,128], index: 1, kind: input, shape index: {}]   ;;  %s2953_s2 = inlined_call_operand.hbm [shape: f32[640,128], index: 2, kind: input, shape index: {}]   ;;  %s2954_s3 = inlined_call_operand.vmem [shape: s32[640,1], index: 3, kind: input, shape index: {}]   ;;  %s2955_s4 = inlined_call_operand.hbm [shape: f32[256,128], index: 4, kind: input, shape index: {}]   ;;  %s2956_s5 = inlined_call_operand.hbm [shape: f32[128,128], index: 5, kind: input, shape index: {}]   ;;  %s2957_s6 = inlined_call_operand.hbm [shape: f32[128,128], index: 6, kind: input, shape index: {}]   ;;  %s2958_s7 = inlined_call_operand.vmem [shape: f32[1,128], index: 7, kind: input, shape index: {}]   ;;  %s2959_s8 = inlined_call_operand.hbm [shape: f32[128,128], index: 8, kind: input, shape index: {}]   ;;  %s2960_s9 = inlined_call_operand.vmem [shape: f32[1,128], index: 9, kind: input, shape index: {}]   ;;  %s2961_s10 = inlined_call_operand.hbm [shape: f32[128,128], index: 10, kind: input, shape index: {}]   ;;  %s2962_s11 = inlined_call_operand.vmem [shape: f32[1,128], index: 11, kind: input, shape index: {}]   ;;  %s2963_s12 = inlined_call_operand.hbm [shape: f32[128,128], index: 12, kind: input, shape index: {}]   ;;  %s2964_s13 = inlined_call_operand.vmem [shape: f32[1,128], index: 13, kind: input, shape index: {}]   ;;  %s2965_s14 = inlined_call_operand.hbm [shape: f32[256,128], index: 14, kind: output, shape index: {}]  }
   0x1   :  { %2976 = sst [smem:[#allocation29_spill]] %s2952_s1 }
   0x2   :  { %2977 = sst [smem:[#allocation30_spill]] %s2953_s2 }
   0x3   :  { %2978 = sst [smem:[#allocation31_spill]] %s2954_s3 }
   0x4   :  { %2979 = sst [smem:[#allocation32_spill]] %s2956_s5 }
   0x5   :  { %2980 = sst [smem:[#allocation33_spill]] %s2957_s6 }
   0x6   :  { %2981 = sst [smem:[#allocation34_spill]] %s2958_s7 }
   0x7   :  { %2982 = sst [smem:[#allocation35_spill]] %s2959_s8 }
   0x8   :  { %2983 = sst [smem:[#allocation36_spill]] %s2960_s9 }
   0x9   :  { %2984 = sst [smem:[#allocation37_spill]] %s2961_s10 }
   0xa   :  { %2985 = sst [smem:[#allocation38_spill]] %s2962_s11 }
   0xb   :  { %2986 = sst [smem:[#allocation39_spill]] %s2963_s12 }
   0xc   :  { %2987 = sst [smem:[#allocation40_spill]] %s2964_s13 }
   0xd   :  { %2988 = sst [smem:[#allocation41_spill]] %s2965_s14 }
   0xe   :  { %19 = sst [smem:[#allocation3]] %s2951_s0 }
   0xf   :  { %20 = vsyncpa [#allocation5], 0 }
  0x10   :  { %22 = vsyncpa [#allocation5 + $0x1], 0 }
  0x11   :  { %23 = vsyncpa [#allocation8], 0 }
  0x12   :  { %25 = vsyncpa [#allocation8 + $0x1], 0 }
  0x13   :  { %26 = vsyncpa [#allocation11], 0 }
  0x14   :  { %27 = vsyncpa [#allocation14], 0 }
  0x15   :  { %28 = vsyncpa [#allocation6], 0 }
  0x16   :  { %30 = vsyncpa [#allocation6 + $0x1], 0  ;;  %s2412_s15 = smov 0   ;;  %s2414_s16 = smov 0  }
  0x17   :  { %s2416_s17 = smov 0   ;;  %s2418_s18 = smov 0  }
  0x18   :  { %s2420_s19 = smov 0   ;;  %s2422_s20 = smov 0  }
  0x19   :  { %s2424_s0 = smov 0   ;;  %s2426_s21 = smov 0  }
  0x1a   :  { %s2428_s22 = smov 0   ;;  %s2430_s23 = smov 0  }
  0x1b   :  { %s2432_s24 = smov 0  }
  0x1c LB: > { %2989 = sst [smem:[#allocation23_spill]] %s2300_s20  ;;  %s2468_s25 = sadd.s32 4294967295, %s2320_s24   ;;  %s2320_s24 = sphi %s2432_s24, %s36_s24   ;;  %s2316_s23 = sphi %s2430_s23, %s3032_s23   ;;  %s2312_s22 = sphi %s2428_s22, %s3024_s22   ;;  %s2308_s21 = sphi %s2426_s21, %s3031_s21   ;;  %s2304_s0 = sphi %s2424_s0, %s3023_s0   ;;  %s2300_s20 = sphi %s2422_s20, %s3022_s20   ;;  %s2296_s19 = sphi %s2420_s19, %s3030_s19   ;;  %s2292_s18 = sphi %s2418_s18, %s3029_s18   ;;  %s2288_s17 = sphi %s2416_s17, %s3028_s17   ;;  %s2284_s16 = sphi %s2414_s16, %s3027_s16   ;;  %s2280_s15 = sphi %s2412_s15, %s3026_s15  }
  0x1d   : > { %2990 = sst [smem:[#allocation24_spill]] %s2308_s21  ;;  %p1712_p0 = scmp.ge.s32.totalorder %s2320_s24, 1 }
  0x1e   : > { %2991 = sst [smem:[#allocation25_spill]] %s2312_s22  ;;  %p95_p1 = scmp.eq.s32.totalorder %s2468_s25, 0 }
  0x1f   : > { %p372_p2 = scmp.lt.s32.totalorder %s2320_s24, 11  ;;  %s2992_s5 = sld [smem:[#allocation32_spill]] }
  0x20   : > { %s2322_s30 = smov [#allocation9]   ;;  %s2995_s6 = sld [smem:[#allocation33_spill]] }
  0x21   : > { %p2476_p3 = pnand %p1712_p0, %p372_p2  ;;  %s385_s14 = sshll.u32 %s2322_s30, 4  ;;  %s386_s14 = int_to_ptr.vmem [resolvable:$true] %s385_s14 }
  0x22   : > { %s2968_s27 = smov 128   ;;  %s2325_s30 = smov [#allocation10]  }
  0x23   : > { %p1826_p4 = pneg %p2476_p3  ;;  %s399_s7 = sshll.u32 %s2325_s30, 4  ;;  %s400_s7 = int_to_ptr.vmem [resolvable:$true] %s399_s7 }
  0x24   : > { %s2996_s10 = sld [smem:[#allocation37_spill]]  ;;  %s2327_s3 = smov [#allocation12]  }
  0x25   : > { %s383_s28 = sshll.u32 %s2992_s5, 4  ;;  %p2484_p5 = pnand %p1826_p4, %p95_p1  ;;  %s384_s28 = int_to_ptr.hbm [resolvable:$true] %s383_s28 }
  0x26   : > { %s397_s26 = sshll.u32 %s2995_s6, 4  ;;  %s2970_s5 = smov 8   ;;  %s398_s26 = int_to_ptr.hbm [resolvable:$true] %s397_s26 }
  0x27   : > { %1829 = dma.hbm_to_vmem [thread:$0]  (!%p2484_p5), %s384_s28, 2048, %s386_s14, [#allocation8], %s2968_s27, %s2968_s27, %s2970_s5  }
  0x28   : > { %1832 = dma.hbm_to_vmem [thread:$0]  (!%p2484_p5), %s398_s26, 2048, %s400_s7, [#allocation11], %s2968_s27, %s2968_s27, %s2970_s5  }
  0x29   : > { %s2997_s8 = sld [smem:[#allocation35_spill]]  ;;  %s2326_s14 = smov [#allocation13]  }
  0x2a   : > { %s431_s1 = sshll.u32 %s2996_s10, 4  ;;  %s433_s28 = sshll.u32 %s2326_s14, 4  ;;  %s432_s1 = int_to_ptr.hbm [resolvable:$true] %s431_s1  ;;  %s434_s28 = int_to_ptr.vmem [resolvable:$true] %s433_s28 }
  0x2b   : > { %1838 = dma.hbm_to_vmem [thread:$0]  (!%p2484_p5), %s432_s1, 2048, %s434_s28, [#allocation14], %s2968_s27, %s2968_s27, %s2970_s5  }
  0x2c   : > { %s416_s7 = sshll.u32 %s2327_s3, 4  ;;  %s2998_s12 = sld [smem:[#allocation39_spill]]  ;;  %s417_s7 = int_to_ptr.vmem [resolvable:$true] %s416_s7 }
  0x2d   : > { %s2328_s1 = smov [#allocation15]   ;;  %s45_s11 = sadd.s32 1, %s2312_s22 }
  0x2e   : > { %s450_s9 = sshll.u32 %s2328_s1, 4  ;;  %p2526_p6 = scmp.ge.s32.totalorder %s45_s11, 5  ;;  %s451_s9 = int_to_ptr.vmem [resolvable:$true] %s450_s9 }
  0x2f   : > { %s414_s6 = sshll.u32 %s2997_s8, 4  ;;  %s81_s28 = sadd.s32 1, %s2300_s20  ;;  %s415_s6 = int_to_ptr.hbm [resolvable:$true] %s414_s6 }
  0x30   : > { %1835 = dma.hbm_to_vmem [thread:$0]  (!%p2484_p5), %s415_s6, 2048, %s417_s7, [#allocation11], %s2968_s27, %s2968_s27, %s2970_s5  }
  0x31   : > { %p88_p7 = scmp.ne.s32.totalorder %s2300_s20, %s2296_s19  ;;  %p89_p8 = scmp.eq.s32.totalorder %s2320_s24, 0 }
  0x32   : > { %s448_s30 = sshll.u32 %s2998_s12, 4  ;;  %s3034_s11 = smov (%p2526_p6, %s45_s11), 0  ;;  %s449_s30 = int_to_ptr.hbm [resolvable:$true] %s448_s30 }
  0x33   : > { %1841 = dma.hbm_to_vmem [thread:$0]  (!%p2484_p5), %s449_s30, 2048, %s451_s9, [#allocation14], %s2968_s27, %s2968_s27, %s2970_s5  }
  0x34   : > { %3000 = sst [smem:[#allocation26_spill]] %s3034_s11  ;;  %p2540_p9 = por %p89_p8, %p88_p7 }
  0x35   : > { %p94_p10 = scmp.ne.s32.totalorder %s2296_s19, %s2292_s18  ;;  %s78_s13 = ssub.s32 %s2312_s22, %s3034_s11 }
  0x36   : > { %p1858_p11 = scmp.lt.s32.totalorder %s2320_s24, 10  ;;  %p79_p12 = scmp.eq.s32.totalorder %s78_s13, 0 }
  0x37   : > { %p2551_p13 = por %p95_p1, %p94_p10  ;;  %s476_s7 = sand.u32 1, %s2300_s20  }
  0x38   : > { %s1762_s21 = sshll.u32 %s2312_s22, 7  ;;  %s1719_s18 = sshll.u32 %s476_s7, 7 }
  0x39   : > { %s2558_s26 = scalar_select %p79_p12, %s2300_s20, %s81_s28  }
  0x3a   : > { %s3004_s2 = sld [smem:[#allocation30_spill]]  ;;  %s480_s27 = scalar_lea.vmem [#allocation4], %s1719_s18 }
  0x3b   : > { %3003 = sst [smem:[#allocation27_spill]] %s2558_s26  ;;  %s488_s5 = sshll.u32 %s480_s27, 4  ;;  %s489_s5 = int_to_ptr.vmem [resolvable:$true] %s488_s5 }
  0x3c   : > { %p1843_p0 = pnand %p1858_p11, %p2540_p9  ;;  %s477_s28 = scalar_lea.sflag [#allocation5], %s476_s7 }
  0x3d   : > { %s3005_s8 = smov 8   ;;  %s3006_s10 = smov 128  }
  0x3e   : > { %s1711_s30 = sadd.s32 4294967294, %s2320_s24   ;;  %s133_s27 = sadd.s32 1, %s2288_s17 }
  0x3f   : > { %p140_p2 = scmp.ne.s32.totalorder %s2288_s17, %s2284_s16  ;;  %p146_p5 = scmp.ne.s32.totalorder %s2284_s16, %s2280_s15 }
  0x40   : > { %s485_s9 = scalar_lea.hbm %s3004_s2, %s1762_s21  ;;  %s48_s21 = sadd.s32 1, %s2316_s23 }
  0x41   : > { %s486_s13 = sshll.u32 %s485_s9, 4  ;;  %s3036_s21 = smov (!%p2526_p6, %s48_s21), %s2316_s23  ;;  %s487_s13 = int_to_ptr.hbm [resolvable:$true] %s486_s13 }
  0x42   : > { %1845 = dma.hbm_to_vmem [thread:$0]  (!%p1843_p0), %s487_s13, 2048, %s489_s5, %s477_s28, %s3006_s10, %s3006_s10, %s3005_s8  }
  0x43   : > { %p50_p4 = scmp.ge.s32.totalorder %s3036_s21, 2  ;;  %p2582_p7 = por %p140_p2, %p89_p8 }
  0x44   : > { %p359_p9 = scmp.eq.s32.totalorder %s2468_s25, 9  ;;  %p2591_p10 = por %p146_p5, %p95_p1 }
  0x45   : > { %s3038_s21 = smov (%p50_p4, %s3036_s21), 0  ;;  %p365_p8 = scmp.eq.s32.totalorder %s1711_s30, 9 }
  0x46   : > { %3008 = sst [smem:[#allocation28_spill]] %s3038_s21  ;;  %p2595_p6 = por %p359_p9, %p140_p2 }
  0x47   : > { %s130_s7 = ssub.s32 %s2316_s23, %s3038_s21  ;;  %s507_s18 = sand.u32 1, %s2320_s24  }
  0x48   : > { %p131_p12 = scmp.eq.s32.totalorder %s130_s7, 0  ;;  %p2602_p0 = por %p365_p8, %p146_p5 }
  0x49   : > { %s509_s13 = sand.u32 1, %s2288_s17   ;;  %s1763_s28 = sshll.u32 %s2316_s23, 7 }
  0x4a   : > { %s2607_s9 = scalar_select %p131_p12, %s2288_s17, %s133_s27  }
  0x4b   : > { %s1722_s2 = sshll.u32 %s509_s13, 7  ;;  %s516_s22 = scalar_lea.hbm %s2955_s4, %s1763_s28 }
  0x4c   : > { %s517_s26 = sshll.u32 %s516_s22, 4  ;;  %s511_s20 = scalar_lea.vmem [#allocation7], %s1722_s2  ;;  %s518_s26 = int_to_ptr.hbm [resolvable:$true] %s517_s26 }
  0x4d   : > { %s519_s21 = sshll.u32 %s511_s20, 4  ;;  %p1846_p2 = pnand %p1858_p11, %p2582_p7  ;;  %s520_s21 = int_to_ptr.vmem [resolvable:$true] %s519_s21 }
  0x4e   : > { %s508_s30 = scalar_lea.sflag [#allocation8], %s507_s18  ;;  %531 = sbr.rel (%p2476_p3) target bundleno = 1205 (0x4b5), region = 72 }
  0x4f   : > { %1848 = dma.hbm_to_vmem [thread:$0]  (!%p1846_p2), %s518_s26, 2048, %s520_s21, %s508_s30, %s3006_s10, %s3006_s10, %s3005_s8  }
  0x50   : > { %s533_s12 = sand.u32 (!%p2476_p3), 1, %s2296_s19  }
  0x51   : > { %s1726_s11 = sshll.u32 (!%p2476_p3), %s533_s12, 7  ;;  %s534_s22 = scalar_lea.sflag (!%p2476_p3), [#allocation5], %s533_s12 }
  0x52   : > { %s2624_s27 = scalar_lea.vmem (!%p2476_p3), [#allocation4], %s1726_s11 }
  0x53   : > { %2255 = dma.done.wait (%p2551_p13), %s534_s22, 2048  }
  0x54   : > { %2257 = vsyncadd (%p2551_p13), %s534_s22, 4294965248  ;;  %s543_s2 = sand.u32 1, %s2468_s25   ;;  %s545_s8 = sand.u32 1, %s2284_s16  }
  0x55   : > { %s1727_s10 = sshll.u32 %s545_s8, 7  ;;  %s544_s20 = scalar_lea.sflag [#allocation8], %s543_s2 }
  0x56   : > { %s2634_s29 = scalar_lea.vmem [#allocation7], %s1727_s10 }
  0x57   : > { %2259 = dma.done.wait (%p2591_p10), %s544_s20, 2048  }
  0x58   : > { %2261 = vsyncadd (%p2591_p10), %s544_s20, 4294965248 }
  0x59   : > { %2263 = dma.done.wait (%p95_p1), [#allocation8], 2048  }
  0x5a   : > { %2265 = vsyncadd (%p95_p1), [#allocation8], 4294965248 }
  0x5b   : > { %2267 = dma.done.wait (%p95_p1), [#allocation11], 4096  }
  0x5c   : > { %2269 = vsyncadd (%p95_p1), [#allocation11], 4294963200 }
  0x5d   : > { %2271 = dma.done.wait (%p95_p1), [#allocation14], 4096  }
  0x5e   : > { %2273 = vsyncadd (%p95_p1), [#allocation14], 4294963200  ;;  %s1734_s3 = sshll.u32 %s2304_s0, 4  ;;  %s3012_s5 = sld [smem:[#allocation29_spill]] }
  0x5f   : > { %p632_p3 = scmp.lt.s32.totalorder %s1734_s3, 79  ;;  %s3013_s28 = sld [smem:[#allocation31_spill]] }
  0x60   : > { %s2663_s12 = scalar_lea.vmem [#allocation16], %s1727_s10  ;;  %p1738_p11 = scmp.ne.s32.totalorder %s2304_s0, 0 }
  0x61   : > { %s3040_s3 = smov (!%p632_p3, %s1734_s3), 79 }
  0x62   : > { %s1735_s26 = sshll.u32 %s3040_s3, 3  ;;  %649 = sbr.rel (%p1738_p11) target bundleno = 120 (0x78), region = 104 }
  0x64   : > { %s2656_s7 = scalar_lea.vmem %s3012_s5, %s1735_s26 }
  0x65   : > { %s2661_s30 = scalar_lea.vmem %s3013_s28, %s1735_s26 }
  0x67   : > { %v2329_v0 = vmov 0.0  }
  0x68   : > { %650 = vst [vmem:[%s2663_s12] sm:$0xff] %v2329_v0 }
  0x69   : > { %651 = vst [vmem:[%s2663_s12 + $0x8] sm:$0xff] %v2329_v0 }
  0x6a   : > { %652 = vst [vmem:[%s2663_s12 + $0x10] sm:$0xff] %v2329_v0 }
  0x6b   : > { %653 = vst [vmem:[%s2663_s12 + $0x18] sm:$0xff] %v2329_v0 }
  0x6c   : > { %654 = vst [vmem:[%s2663_s12 + $0x20] sm:$0xff] %v2329_v0 }
  0x6d   : > { %655 = vst [vmem:[%s2663_s12 + $0x28] sm:$0xff] %v2329_v0 }
  0x6e   : > { %656 = vst [vmem:[%s2663_s12 + $0x30] sm:$0xff] %v2329_v0 }
  0x6f   : > { %657 = vst [vmem:[%s2663_s12 + $0x38] sm:$0xff] %v2329_v0 }
  0x70   : > { %658 = vst [vmem:[%s2663_s12 + $0x40] sm:$0xff] %v2329_v0 }
  0x71   : > { %659 = vst [vmem:[%s2663_s12 + $0x48] sm:$0xff] %v2329_v0 }
  0x72   : > { %660 = vst [vmem:[%s2663_s12 + $0x50] sm:$0xff] %v2329_v0 }
  0x73   : > { %661 = vst [vmem:[%s2663_s12 + $0x58] sm:$0xff] %v2329_v0 }
  0x74   : > { %662 = vst [vmem:[%s2663_s12 + $0x60] sm:$0xff] %v2329_v0 }
  0x75   : > { %663 = vst [vmem:[%s2663_s12 + $0x68] sm:$0xff] %v2329_v0 }
  0x76   : > { %664 = vst [vmem:[%s2663_s12 + $0x70] sm:$0xff] %v2329_v0 }
  0x77   : > { %665 = vst [vmem:[%s2663_s12 + $0x78] sm:$0xff] %v2329_v0 }
  0x78 PF: > { %v729_v1 = vld [vmem:[#allocation10 + $0x78] sm:$0xff]  ;;  %v728_v3 = vld [vmem:[#allocation10 + $0x70] sm:$0xff]  ;;  %v727_v5 = vld [vmem:[#allocation10 + $0x68] sm:$0xff]  ;;  %v2330_v15 = vmov 0   ;;  %s3014_s25 = sld [smem:[#allocation24_spill]]  ;;  %p1756_p1 = scmp.ne.s32.totalorder %s2304_s0, 4 }
  0x79   : > { %v697_v2 = vld [vmem:[#allocation9 + $0x78] sm:$0xff]  ;;  %730 = vmatpush.msra.mxu0 %v729_v1  ;;  %v696_v4 = vld [vmem:[#allocation9 + $0x70] sm:$0xff]  ;;  %v695_v6 = vld [vmem:[#allocation9 + $0x68] sm:$0xff]  ;;  %1965 = vset.pattern.permute.xlu0 %v2330_v15  ;;  %s3015_s10 = sld [smem:[#allocation34_spill]] }
  0x7a   : > { %795 = vmatpush.msra.mxu1 %v697_v2  ;;  %v726_v7 = vld [vmem:[#allocation10 + $0x60] sm:$0xff]  ;;  %v725_v9 = vld [vmem:[#allocation10 + $0x58] sm:$0xff]  ;;  %v724_v11 = vld [vmem:[#allocation10 + $0x50] sm:$0xff]  ;;  %1966 = vset.pattern.permute.xlu1 %v2330_v15  ;;  %s3016_s3 = sld [smem:[#allocation36_spill]] }
  0x7b   : > { %731 = vmatpush.msra.mxu0 %v728_v3  ;;  %v694_v8 = vld [vmem:[#allocation9 + $0x60] sm:$0xff]  ;;  %v693_v10 = vld [vmem:[#allocation9 + $0x58] sm:$0xff]  ;;  %v692_v12 = vld [vmem:[#allocation9 + $0x50] sm:$0xff]  ;;  %1967 = vset.pattern.permute.xlu2 %v2330_v15  ;;  %s1247_s26 = sld [smem:[#allocation3]] (!%p1756_p1) }
  0x7c   : > { %796 = vmatpush.msra.mxu1 %v696_v4  ;;  %v723_v13 = vld [vmem:[#allocation10 + $0x48] sm:$0xff]  ;;  %v722_v16 = vld [vmem:[#allocation10 + $0x40] sm:$0xff]  ;;  %v721_v19 = vld [vmem:[#allocation10 + $0x38] sm:$0xff]  ;;  %s3017_s6 = sld [smem:[#allocation38_spill]] (!%p1756_p1) }
  0x7d   : > { %732 = vmatpush.msra.mxu0 %v727_v5  ;;  %v691_v14 = vld [vmem:[#allocation9 + $0x48] sm:$0xff]  ;;  %v690_v17 = vld [vmem:[#allocation9 + $0x40] sm:$0xff]  ;;  %v689_v20 = vld [vmem:[#allocation9 + $0x38] sm:$0xff]  ;;  %s3018_s18 = sld [smem:[#allocation40_spill]] (!%p1756_p1) }
  0x7e   : > { %797 = vmatpush.msra.mxu1 %v695_v6  ;;  %v986_v18 = vld [vmem:[%s2661_s30] sm:$0xff]  ;;  %v720_v21 = vld [vmem:[#allocation10 + $0x30] sm:$0xff]  ;;  %v719_v23 = vld [vmem:[#allocation10 + $0x28] sm:$0xff]  ;;  %s1739_s11 = sshll.u32 %s3014_s25, 7 }
  0x7f   : > { %733 = vmatpush.msra.mxu0 %v726_v7  ;;  %1003 = vperm.xlu0 %1965, %v986_v18   ;;  %v688_v22 = vld [vmem:[#allocation9 + $0x30] sm:$0xff]  ;;  %v687_v24 = vld [vmem:[#allocation9 + $0x28] sm:$0xff]  ;;  %v718_v26 = vld [vmem:[#allocation10 + $0x20] sm:$0xff] }
  0x80   : > { %798 = vmatpush.msra.mxu1 %v694_v8  ;;  %v987_v25 = vld [vmem:[%s2661_s30 + $0x8] sm:$0xff]  ;;  %v686_v27 = vld [vmem:[#allocation9 + $0x20] sm:$0xff]  ;;  %v717_v28 = vld [vmem:[#allocation10 + $0x18] sm:$0xff] }
  0x81   : > { %734 = vmatpush.msra.mxu0 %v725_v9  ;;  %v685_v29 = vld [vmem:[#allocation9 + $0x18] sm:$0xff]  ;;  %v716_v30 = vld [vmem:[#allocation10 + $0x10] sm:$0xff]  ;;  %v715_v33 = vld [vmem:[#allocation10 + $0x8] sm:$0xff]  ;;  %s1248_s0 = sadd.f32 (!%p1756_p1), 1.0, %s1247_s26 }
  0x82   : > { %799 = vmatpush.msra.mxu1 %v693_v10  ;;  %v684_v31 = vld [vmem:[#allocation9 + $0x10] sm:$0xff]  ;;  %v683_v34 = vld [vmem:[#allocation9 + $0x8] sm:$0xff]  ;;  %v714_v35 = vld [vmem:[#allocation10] sm:$0xff] }
  0x83   : > { %735 = vmatpush.msra.mxu0 %v724_v11  ;;  %v988_v32 = vld [vmem:[%s2661_s30 + $0x10] sm:$0xff]  ;;  %v682_v36 = vld [vmem:[#allocation9] sm:$0xff]  ;;  %v989_v39 = vld [vmem:[%s2661_s30 + $0x18] sm:$0xff] }
  0x84   : > { %800 = vmatpush.msra.mxu1 %v692_v12  ;;  %1009 = vperm.xlu1 %1966, %v988_v32   ;;  %v698_v37 = vld [vmem:[%s2624_s27] sm:$0xff]  ;;  %v699_v40 = vld [vmem:[%s2624_s27 + $0x8] sm:$0xff]  ;;  %v700_v42 = vld [vmem:[%s2624_s27 + $0x10] sm:$0xff] }
  0x85   : > { %736 = vmatpush.msra.mxu0 %v723_v13  ;;  %v666_v38 = vld [vmem:[%s2656_s7] sm:$0xff]  ;;  %v667_v41 = vld [vmem:[%s2656_s7 + $0x8] sm:$0xff]  ;;  %v668_v43 = vld [vmem:[%s2656_s7 + $0x10] sm:$0xff] }
  0x86   : > { %801 = vmatpush.msra.mxu1 %v691_v14  ;;  %v701_v44 = vld [vmem:[%s2624_s27 + $0x18] sm:$0xff]  ;;  %v992_v47 = vld [vmem:[%s2661_s30 + $0x30] sm:$0xff]  ;;  %v702_v48 = vld [vmem:[%s2624_s27 + $0x20] sm:$0xff] }
  0x87   : > { %737 = vmatpush.msra.mxu0 %v722_v16  ;;  %1006 = vperm.xlu0 %1965, %v987_v25   ;;  %v669_v45 = vld [vmem:[%s2656_s7 + $0x18] sm:$0xff]  ;;  %v670_v49 = vld [vmem:[%s2656_s7 + $0x20] sm:$0xff]  ;;  %v996_v51 = vld [vmem:[%s2661_s30 + $0x50] sm:$0xff] }
  0x88   : > { %802 = vmatpush.msra.mxu1 %v690_v17  ;;  %v993_v46 = vld [vmem:[%s2661_s30 + $0x38] sm:$0xff]  ;;  %v990_v50 = vld [vmem:[%s2661_s30 + $0x20] sm:$0xff]  ;;  %v703_v52 = vld [vmem:[%s2624_s27 + $0x28] sm:$0xff] }
  0x89   : > { %738 = vmatpush.msra.mxu0 %v721_v19  ;;  %1015 = vperm.xlu2 %1967, %v990_v50   ;;  %v671_v53 = vld [vmem:[%s2656_s7 + $0x28] sm:$0xff]  ;;  %v704_v56 = vld [vmem:[%s2624_s27 + $0x30] sm:$0xff]  ;;  %v705_v59 = vld [vmem:[%s2624_s27 + $0x38] sm:$0xff] }
  0x8a   : > { %803 = vmatpush.msra.mxu1 %v689_v20  ;;  %v991_v54 = vld [vmem:[%s2661_s30 + $0x28] sm:$0xff]  ;;  %v672_v57 = vld [vmem:[%s2656_s7 + $0x30] sm:$0xff]  ;;  %v673_v60 = vld [vmem:[%s2656_s7 + $0x38] sm:$0xff]  ;;  %v981_v20 = vlaneseq }
  0x8b   : > { %739 = vmatpush.msra.mxu0 %v720_v21  ;;  %v999_v55 = vld [vmem:[%s2661_s30 + $0x68] sm:$0xff]  ;;  %v706_v61 = vld [vmem:[%s2624_s27 + $0x40] sm:$0xff]  ;;  %v911_v63 = vld [vmem:[#allocation12 + $0x78] sm:$0xff] }
  0x8c   : > { %804 = vmatpush.msra.mxu1 %v688_v22  ;;  %1012 = vperm.xlu1 %1966, %v989_v39   ;;  %v995_v58 = vld [vmem:[%s2661_s30 + $0x48] sm:$0xff]  ;;  %v674_v62 = vld [vmem:[%s2656_s7 + $0x40] sm:$0xff]  ;;  %v910_v1 = vld [vmem:[#allocation12 + $0x70] sm:$0xff]  ;;  %v982_v25 = vand.u32 127, %v981_v20 }
  0x8d   : > { %740 = vmatpush.msra.mxu0 %v719_v23  ;;  %v994_v0 = vld [vmem:[%s2661_s30 + $0x40] sm:$0xff]  ;;  %916 = vmatpush.msra.mxu2 %v911_v63  ;;  %v707_v2 = vld [vmem:[%s2624_s27 + $0x48] sm:$0xff]  ;;  %v907_v7 = vld [vmem:[#allocation12 + $0x58] sm:$0xff] }
  0x8e   : > { %805 = vmatpush.msra.mxu1 %v687_v24  ;;  %v675_v3 = vld [vmem:[%s2656_s7 + $0x48] sm:$0xff]  ;;  %v908_v5 = vld [vmem:[#allocation12 + $0x60] sm:$0xff]  ;;  %v906_v8 = vld [vmem:[#allocation12 + $0x50] sm:$0xff] }
  0x8f   : > { %741 = vmatpush.msra.mxu0 %v718_v26  ;;  %1021 = vperm.xlu0 %1965, %v992_v47   ;;  %v909_v4 = vld [vmem:[#allocation12 + $0x68] sm:$0xff]  ;;  %v998_v6 = vld [vmem:[%s2661_s30 + $0x60] sm:$0xff]  ;;  %v708_v9 = vld [vmem:[%s2624_s27 + $0x50] sm:$0xff]  ;;  %v984_v26 = vstv %s1739_s11 }
  0x90   : > { %806 = vmatpush.msra.mxu1 %v686_v27  ;;  %917 = vmatpush.msra.mxu2 %v910_v1  ;;  %v676_v10 = vld [vmem:[%s2656_s7 + $0x50] sm:$0xff]  ;;  %v905_v11 = vld [vmem:[#allocation12 + $0x48] sm:$0xff]  ;;  %v904_v12 = vld [vmem:[#allocation12 + $0x40] sm:$0xff] }
  0x91   : > { %742 = vmatpush.msra.mxu0 %v717_v28  ;;  %1018 = vperm.xlu2 %1967, %v991_v54   ;;  %v903_v13 = vld [vmem:[#allocation12 + $0x38] sm:$0xff]  ;;  %v902_v14 = vld [vmem:[#allocation12 + $0x30] sm:$0xff]  ;;  %v901_v17 = vld [vmem:[#allocation12 + $0x28] sm:$0xff] }
  0x92   : > { %807 = vmatpush.msra.mxu1 %v685_v29  ;;  %918 = vmatpush.msra.mxu2 %v909_v4  ;;  %v709_v15 = vld [vmem:[%s2624_s27 + $0x58] sm:$0xff]  ;;  %v900_v18 = vld [vmem:[#allocation12 + $0x20] sm:$0xff]  ;;  %v898_v24 = vld [vmem:[#allocation12 + $0x10] sm:$0xff]  ;;  %v2725_v29 = vadd.s32 %v984_v26, %v982_v25 }
  0x93   : > { %743 = vmatpush.msra.mxu0 %v716_v30  ;;  %v677_v16 = vld [vmem:[%s2656_s7 + $0x58] sm:$0xff]  ;;  %v710_v21 = vld [vmem:[%s2624_s27 + $0x60] sm:$0xff]  ;;  %v897_v27 = vld [vmem:[#allocation12 + $0x8] sm:$0xff] }
  0x94   : > { %808 = vmatpush.msra.mxu1 %v684_v31  ;;  %1024 = vperm.xlu1 %1966, %v993_v46   ;;  %v899_v19 = vld [vmem:[#allocation12 + $0x18] sm:$0xff]  ;;  %v678_v22 = vld [vmem:[%s2656_s7 + $0x60] sm:$0xff]  ;;  %v2331_v31 = vmov 0.0   ;;  %v680_v39 = vld [vmem:[%s2656_s7 + $0x70] sm:$0xff] }
  0x95   : > { %744 = vmatpush.msra.mxu0 %v715_v33  ;;  %919 = vmatpush.msra.mxu2 %v908_v5  ;;  %v997_v23 = vld [vmem:[%s2661_s30 + $0x58] sm:$0xff]  ;;  %v896_v30 = vld [vmem:[#allocation12] sm:$0xff]  ;;  %v711_v33 = vld [vmem:[%s2624_s27 + $0x68] sm:$0xff] }
  0x96   : > { %809 = vmatpush.msra.mxu1 %v683_v34  ;;  %v679_v34 = vld [vmem:[%s2656_s7 + $0x68] sm:$0xff]  ;;  %v2746_v47 = vld [vmem:[%s3015_s10] ss:$0 sm:$0xff] }
  0x97   : > { %745 = vmatpush.msra.mxu0 %v714_v35  ;;  %1030 = vperm.xlu0 %1965, %v995_v58   ;;  %v1001_v35 = vld [vmem:[%s2661_s30 + $0x78] sm:$0xff] }
  0x98   : > { %810 = vmatpush.msra.mxu1 %v682_v36  ;;  %746 = vmatmul.f32.vlgmr.msra.gmra.mxu0 %v698_v37 }
  0x99   : > { %811 = vmatmul.f32.vlgmr.msra.gmra.mxu1 %v666_v38  ;;  %1027 = vperm.xlu2 %1967, %v994_v0   ;;  %v712_v38 = vld [vmem:[%s2624_s27 + $0x70] sm:$0xff] }
  0x9a   : > { %920 = vmatpush.msra.mxu2 %v907_v7 }
  0x9c   : > { %1033 = vperm.xlu1 %1966, %v996_v51   ;;  %921 = vmatpush.msra.mxu2 %v906_v8 }
  0x9e   : > { %922 = vmatpush.msra.mxu2 %v905_v11 }
  0x9f   : > { %1039 = vperm.xlu0 %1965, %v998_v6  }
  0xa0   : > { %749 = vmatmul.f32.gmra.mxu0 %v699_v40  ;;  %923 = vmatpush.msra.mxu2 %v904_v12 }
  0xa1   : > { %814 = vmatmul.f32.gmra.mxu1 %v667_v41  ;;  %1036 = vperm.xlu2 %1967, %v997_v23  }
  0xa2   : > { %924 = vmatpush.msra.mxu2 %v903_v13 }
  0xa4   : > { %1042 = vperm.xlu1 %1966, %v999_v55   ;;  %925 = vmatpush.msra.mxu2 %v902_v14 }
  0xa6   : > { %926 = vmatpush.msra.mxu2 %v901_v17 }
  0xa7   : > { %1048 = vperm.xlu0 %1965, %v1001_v35  }
  0xa8   : > { %752 = vmatmul.f32.gmra.mxu0 %v700_v42  ;;  %927 = vmatpush.msra.mxu2 %v900_v18  ;;  %v713_v42 = vld [vmem:[%s2624_s27 + $0x78] sm:$0xff] }
  0xa9   : > { %817 = vmatmul.f32.gmra.mxu1 %v668_v43  ;;  %v681_v43 = vld [vmem:[%s2656_s7 + $0x78] sm:$0xff] }
  0xaa   : > { %928 = vmatpush.msra.mxu2 %v899_v19 }
  0xac   : > { %929 = vmatpush.msra.mxu2 %v898_v24 }
  0xae   : > { %930 = vmatpush.msra.mxu2 %v897_v27 }
  0xb0   : > { %755 = vmatmul.f32.gmra.mxu0 %v701_v44  ;;  %931 = vmatpush.msra.mxu2 %v896_v30  ;;  %v1000_v44 = vld [vmem:[%s2661_s30 + $0x70] sm:$0xff] }
  0xb1   : > { %820 = vmatmul.f32.gmra.mxu1 %v669_v45  ;;  %1045 = vperm.xlu2 %1967, %v1000_v44  }
  0xb8   : > { %758 = vmatmul.f32.gmra.mxu0 %v702_v48 }
  0xb9   : > { %823 = vmatmul.f32.gmra.mxu1 %v670_v49 }
  0xc0   : > { %761 = vmatmul.f32.gmra.mxu0 %v703_v52 }
  0xc1   : > { %826 = vmatmul.f32.gmra.mxu1 %v671_v53 }
  0xc8   : > { %764 = vmatmul.f32.gmra.mxu0 %v704_v56 }
  0xc9   : > { %829 = vmatmul.f32.gmra.mxu1 %v672_v57 }
  0xd0   : > { %767 = vmatmul.f32.gmra.mxu0 %v705_v59 }
  0xd1   : > { %832 = vmatmul.f32.gmra.mxu1 %v673_v60 }
  0xd8   : > { %770 = vmatmul.f32.gmra.mxu0 %v706_v61 }
  0xd9   : > { %835 = vmatmul.f32.gmra.mxu1 %v674_v62 }
  0xe0   : > { %773 = vmatmul.f32.gmra.mxu0 %v707_v2 }
  0xe1   : > { %838 = vmatmul.f32.gmra.mxu1 %v675_v3 }
  0xe3   : > { %v1016_v51 = vpop.permute.xlu2 %1015 }
  0xe4   : > { %vm1054_vm4 = vcmp.eq.s32.totalorder %v2725_v29, %v1016_v51 }
  0xe5   : > { %v1744_v53 = vsel %vm1054_vm4, 1.0, %v2331_v31 }
  0xe8   : > { %776 = vmatmul.f32.gmra.mxu0 %v708_v9 }
  0xe9   : > { %841 = vmatmul.f32.gmra.mxu1 %v676_v10 }
  0xeb   : > { %v1019_v58 = vpop.permute.xlu2 %1018 }
  0xec   : > { %vm1055_vm5 = vcmp.eq.s32.totalorder %v2725_v29, %v1019_v58 }
  0xed   : > { %v1745_v60 = vsel %vm1055_vm5, 1.0, %v2331_v31 }
  0xf0   : > { %779 = vmatmul.f32.gmra.mxu0 %v709_v15 }
  0xf1   : > { %844 = vmatmul.f32.gmra.mxu1 %v677_v16  ;;  %v1004_v28 = vpop.permute.xlu0 %1003 }
  0xf2   : > { %vm1050_vm0 = vcmp.eq.s32.totalorder %v2725_v29, %v1004_v28 }
  0xf3   : > { %v1740_v32 = vsel %vm1050_vm0, 1.0, %v2331_v31  ;;  %v1028_v15 = vpop.permute.xlu2 %1027 }
  0xf4   : > { %1114 = vxpose.xlu1.b32.start [1/16] %v1740_v32, 128  ;;  %vm1058_vm8 = vcmp.eq.s32.totalorder %v2725_v29, %v1028_v15 }
  0xf5   : > { %v1748_v17 = vsel %vm1058_vm8, 1.0, %v2331_v31 }
  0xf6   : > { %v1010_v40 = vpop.permute.xlu1 %1009 }
  0xf7   : > { %vm1052_vm2 = vcmp.eq.s32.totalorder %v2725_v29, %v1010_v40 }
  0xf8   : > { %782 = vmatmul.f32.gmra.mxu0 %v710_v21  ;;  %v1742_v41 = vsel %vm1052_vm2, 1.0, %v2331_v31 }
  0xf9   : > { %847 = vmatmul.f32.gmra.mxu1 %v678_v22  ;;  %v1007_v36 = vpop.permute.xlu0 %1006 }
  0xfa   : > { %vm1051_vm1 = vcmp.eq.s32.totalorder %v2725_v29, %v1007_v36 }
  0xfb   : > { %v1741_v37 = vsel %vm1051_vm1, 1.0, %v2331_v31 }
  0xfc   : > { %1115 = vxpose.xlu1.b32.cont [2/16] %v1741_v37, 128 }
  0xfe   : > { %v1013_v45 = vpop.permute.xlu1 %1012 }
  0xff   : > { %vm1053_vm3 = vcmp.eq.s32.totalorder %v2725_v29, %v1013_v45 }
 0x100   : > { %785 = vmatmul.f32.gmra.mxu0 %v711_v33  ;;  %v1743_v46 = vsel %vm1053_vm3, 1.0, %v2331_v31 }
 0x101   : > { %850 = vmatmul.f32.gmra.mxu1 %v679_v34  ;;  %v1022_v1 = vpop.permute.xlu0 %1021 }
 0x102   : > { %vm1056_vm6 = vcmp.eq.s32.totalorder %v2725_v29, %v1022_v1 }
 0x103   : > { %v1746_v3 = vsel %vm1056_vm6, 1.0, %v2331_v31 }
 0x104   : > { %1116 = vxpose.xlu1.b32.cont [3/16] %v1742_v41, 128 }
 0x106   : > { %v1025_v8 = vpop.permute.xlu1 %1024 }
 0x107   : > { %vm1057_vm7 = vcmp.eq.s32.totalorder %v2725_v29, %v1025_v8 }
 0x108   : > { %788 = vmatmul.f32.gmra.mxu0 %v712_v38  ;;  %v1747_v10 = vsel %vm1057_vm7, 1.0, %v2331_v31 }
 0x109   : > { %853 = vmatmul.f32.gmra.mxu1 %v680_v39  ;;  %v1031_v22 = vpop.permute.xlu0 %1030  ;;  %v1037_v39 = vpop.permute.xlu2 %1036 }
 0x10a   : > { %vm1059_vm9 = vcmp.eq.s32.totalorder %v2725_v29, %v1031_v22  ;;  %vm1061_vm11 = vcmp.eq.s32.totalorder %v2725_v29, %v1037_v39 }
 0x10b   : > { %v1749_v24 = vsel %vm1059_vm9, 1.0, %v2331_v31  ;;  %v1751_v41 = vsel %vm1061_vm11, 1.0, %v2331_v31 }
 0x10c   : > { %1117 = vxpose.xlu1.b32.cont [4/16] %v1743_v46, 128 }
 0x10e   : > { %v1034_v30 = vpop.permute.xlu1 %1033 }
 0x10f   : > { %vm1060_vm10 = vcmp.eq.s32.totalorder %v2725_v29, %v1034_v30 }
 0x110   : > { %791 = vmatmul.f32.gmra.mxu0 %v713_v42  ;;  %v1750_v33 = vsel %vm1060_vm10, 1.0, %v2331_v31 }
 0x111   : > { %856 = vmatmul.f32.gmra.mxu1 %v681_v43  ;;  %v1040_v45 = vpop.permute.xlu0 %1039 }
 0x112   : > { %vm1062_vm12 = vcmp.eq.s32.totalorder %v2725_v29, %v1040_v45 }
 0x114   : > { %1118 = vxpose.xlu1.b32.cont [5/16] %v1744_v53, 128 }
 0x115   : > { %v747_v48 = vpop.f32.mrf.mxu0 }
 0x116   : > { %v812_v49 = vpop.f32.mrf.mxu1  ;;  %v1043_v53 = vpop.permute.xlu1 %1042 }
 0x117   : > { %v813_v50 = vadd.f32 %v812_v49, %v747_v48  ;;  %v1752_v48 = vsel %vm1062_vm12, 1.0, %v2331_v31  ;;  %vm1063_vm13 = vcmp.eq.s32.totalorder %v2725_v29, %v1043_v53 }
 0x119   : > { %v864_v52 = vadd.f32 %v2746_v47, %v813_v50 }
 0x11b   : > { %v880_v54 = vmax.f32 %v864_v52, 0.0 }
 0x11c   : > { %1119 = vxpose.xlu1.b32.cont [6/16] %v1745_v60, 128 }
 0x11d   : > { %932 = vmatmul.f32.vlgmr.msra.gmra.mxu2 %v880_v54  ;;  %v750_v55 = vpop.f32.mrf.mxu0 }
 0x11e   : > { %v815_v56 = vpop.f32.mrf.mxu1 }
 0x11f   : > { %v816_v57 = vadd.f32 %v815_v56, %v750_v55  ;;  %v1753_v55 = vsel %vm1063_vm13, 1.0, %v2331_v31 }
 0x121   : > { %v865_v59 = vadd.f32 %v2746_v47, %v816_v57 }
 0x123   : > { %v881_v61 = vmax.f32 %v865_v59, 0.0 }
 0x124   : > { %1120 = vxpose.xlu1.b32.cont [7/16] %v1746_v3, 128 }
 0x125   : > { %935 = vmatmul.f32.gmra.mxu2 %v881_v61  ;;  %v753_v62 = vpop.f32.mrf.mxu0  ;;  %v1046_v61 = vpop.permute.xlu2 %1045 }
 0x126   : > { %v818_v63 = vpop.f32.mrf.mxu1  ;;  %vm1064_vm14 = vcmp.eq.s32.totalorder %v2725_v29, %v1046_v61 }
 0x127   : > { %v819_v0 = vadd.f32 %v818_v63, %v753_v62  ;;  %v1754_v63 = vsel %vm1064_vm14, 1.0, %v2331_v31 }
 0x129   : > { %v866_v2 = vadd.f32 %v2746_v47, %v819_v0 }
 0x12b   : > { %v882_v4 = vmax.f32 %v866_v2, 0.0 }
 0x12c   : > { %1121 = vxpose.xlu1.b32.cont [8/16] %v1747_v10, 128 }
 0x12d   : > { %938 = vmatmul.f32.gmra.mxu2 %v882_v4  ;;  %v756_v5 = vpop.f32.mrf.mxu0  ;;  %v1049_v4 = vpop.permute.xlu0 %1048 }
 0x12e   : > { %v821_v6 = vpop.f32.mrf.mxu1  ;;  %vm1065_vm15 = vcmp.eq.s32.totalorder %v2725_v29, %v1049_v4 }
 0x12f   : > { %v822_v7 = vadd.f32 %v821_v6, %v756_v5  ;;  %v1755_v6 = vsel %vm1065_vm15, 1.0, %v2331_v31 }
 0x131   : > { %v867_v9 = vadd.f32 %v2746_v47, %v822_v7 }
 0x133   : > { %v883_v11 = vmax.f32 %v867_v9, 0.0 }
 0x134   : > { %1122 = vxpose.xlu1.b32.cont [9/16] %v1748_v17, 128 }
 0x135   : > { %941 = vmatmul.f32.gmra.mxu2 %v883_v11  ;;  %v759_v12 = vpop.f32.mrf.mxu0 }
 0x136   : > { %v824_v13 = vpop.f32.mrf.mxu1 }
 0x137   : > { %v825_v14 = vadd.f32 %v824_v13, %v759_v12 }
 0x139   : > { %v868_v16 = vadd.f32 %v2746_v47, %v825_v14 }
 0x13b   : > { %v884_v18 = vmax.f32 %v868_v16, 0.0 }
 0x13c   : > { %1123 = vxpose.xlu1.b32.cont [10/16] %v1749_v24, 128 }
 0x13d   : > { %944 = vmatmul.f32.gmra.mxu2 %v884_v18  ;;  %v762_v19 = vpop.f32.mrf.mxu0 }
 0x13e   : > { %v827_v20 = vpop.f32.mrf.mxu1 }
 0x13f   : > { %v828_v21 = vadd.f32 %v827_v20, %v762_v19 }
 0x141   : > { %v869_v23 = vadd.f32 %v2746_v47, %v828_v21 }
 0x143   : > { %v885_v25 = vmax.f32 %v869_v23, 0.0 }
 0x144   : > { %1124 = vxpose.xlu1.b32.cont [11/16] %v1750_v33, 128 }
 0x145   : > { %947 = vmatmul.f32.gmra.mxu2 %v885_v25  ;;  %v765_v26 = vpop.f32.mrf.mxu0 }
 0x146   : > { %v830_v27 = vpop.f32.mrf.mxu1 }
 0x147   : > { %v831_v28 = vadd.f32 %v830_v27, %v765_v26 }
 0x149   : > { %v870_v32 = vadd.f32 %v2746_v47, %v831_v28 }
 0x14b   : > { %v886_v34 = vmax.f32 %v870_v32, 0.0 }
 0x14c   : > { %1125 = vxpose.xlu1.b32.cont [12/16] %v1751_v41, 128 }
 0x14d   : > { %950 = vmatmul.f32.gmra.mxu2 %v886_v34  ;;  %v768_v35 = vpop.f32.mrf.mxu0 }
 0x14e   : > { %v833_v36 = vpop.f32.mrf.mxu1 }
 0x14f   : > { %v834_v37 = vadd.f32 %v833_v36, %v768_v35 }
 0x151   : > { %v871_v38 = vadd.f32 %v2746_v47, %v834_v37 }
 0x153   : > { %v887_v40 = vmax.f32 %v871_v38, 0.0 }
 0x154   : > { %1126 = vxpose.xlu1.b32.cont [13/16] %v1752_v48, 128 }
 0x155   : > { %953 = vmatmul.f32.gmra.mxu2 %v887_v40  ;;  %v771_v42 = vpop.f32.mrf.mxu0 }
 0x156   : > { %v836_v43 = vpop.f32.mrf.mxu1 }
 0x157   : > { %v837_v44 = vadd.f32 %v836_v43, %v771_v42 }
 0x159   : > { %v872_v46 = vadd.f32 %v2746_v47, %v837_v44 }
 0x15b   : > { %v888_v49 = vmax.f32 %v872_v46, 0.0 }
 0x15c   : > { %1127 = vxpose.xlu1.b32.cont [14/16] %v1753_v55, 128 }
 0x15d   : > { %956 = vmatmul.f32.gmra.mxu2 %v888_v49  ;;  %v774_v50 = vpop.f32.mrf.mxu0 }
 0x15e   : > { %v839_v51 = vpop.f32.mrf.mxu1 }
 0x15f   : > { %v840_v52 = vadd.f32 %v839_v51, %v774_v50 }
 0x161   : > { %v873_v54 = vadd.f32 %v2746_v47, %v840_v52 }
 0x163   : > { %v889_v56 = vmax.f32 %v873_v54, 0.0 }
 0x164   : > { %1128 = vxpose.xlu1.b32.cont [15/16] %v1754_v63, 128 }
 0x165   : > { %959 = vmatmul.f32.gmra.mxu2 %v889_v56  ;;  %v777_v57 = vpop.f32.mrf.mxu0 }
 0x166   : > { %v842_v58 = vpop.f32.mrf.mxu1 }
 0x167   : > { %v843_v59 = vadd.f32 %v842_v58, %v777_v57 }
 0x169   : > { %v874_v60 = vadd.f32 %v2746_v47, %v843_v59 }
 0x16b   : > { %v890_v62 = vmax.f32 %v874_v60, 0.0 }
 0x16c   : > { %1129 = vxpose.xlu1.b32.end [16/16] %v1755_v6, 128 }
 0x16d   : > { %962 = vmatmul.f32.gmra.mxu2 %v890_v62  ;;  %v780_v0 = vpop.f32.mrf.mxu0 }
 0x16e   : > { %v845_v1 = vpop.f32.mrf.mxu1 }
 0x16f   : > { %v846_v2 = vadd.f32 %v845_v1, %v780_v0 }
 0x171   : > { %v875_v3 = vadd.f32 %v2746_v47, %v846_v2 }
 0x173   : > { %v891_v5 = vmax.f32 %v875_v3, 0.0 }
 0x175   : > { %965 = vmatmul.f32.gmra.mxu2 %v891_v5  ;;  %v783_v7 = vpop.f32.mrf.mxu0 }
 0x176   : > { %v848_v8 = vpop.f32.mrf.mxu1 }
 0x177   : > { %v849_v9 = vadd.f32 %v848_v8, %v783_v7 }
 0x179   : > { %v876_v10 = vadd.f32 %v2746_v47, %v849_v9 }
 0x17b   : > { %v892_v11 = vmax.f32 %v876_v10, 0.0 }
 0x17d   : > { %968 = vmatmul.f32.gmra.mxu2 %v892_v11  ;;  %v786_v12 = vpop.f32.mrf.mxu0 }
 0x17e   : > { %v851_v13 = vpop.f32.mrf.mxu1 }
 0x17f   : > { %v852_v14 = vadd.f32 %v851_v13, %v786_v12  ;;  %v1098_v12 = vld [vmem:[%s2663_s12] sm:$0xff] }
 0x181   : > { %v877_v15 = vadd.f32 %v2746_v47, %v852_v14 }
 0x183   : > { %v893_v16 = vmax.f32 %v877_v15, 0.0  ;;  %v1099_v15 = vld [vmem:[%s2663_s12 + $0x8] sm:$0xff] }
 0x185   : > { %971 = vmatmul.f32.gmra.mxu2 %v893_v16  ;;  %v789_v17 = vpop.f32.mrf.mxu0 }
 0x186   : > { %v854_v29 = vpop.f32.mrf.mxu1 }
 0x187   : > { %v855_v18 = vadd.f32 %v854_v29, %v789_v17  ;;  %v1100_v29 = vld [vmem:[%s2663_s12 + $0x10] sm:$0xff] }
 0x189   : > { %v878_v31 = vadd.f32 %v2746_v47, %v855_v18 }
 0x18b   : > { %v894_v19 = vmax.f32 %v878_v31, 0.0 }
 0x18d   : > { %974 = vmatmul.f32.gmra.mxu2 %v894_v19  ;;  %v792_v20 = vpop.f32.mrf.mxu0  ;;  %v1101_v19 = vld [vmem:[%s2663_s12 + $0x18] sm:$0xff] }
 0x18e   : > { %v857_v21 = vpop.f32.mrf.mxu1 }
 0x18f   : > { %v858_v22 = vadd.f32 %v857_v21, %v792_v20 }
 0x191   : > { %v879_v23 = vadd.f32 %v2746_v47, %v858_v22  ;;  %v1969_v47 = vld [vmem:[%s3016_s3] ss:$0 sm:$0xff] }
 0x192   : > { %v1102_v22 = vld [vmem:[%s2663_s12 + $0x20] sm:$0xff] }
 0x193   : > { %v895_v24 = vmax.f32 %v879_v23, 0.0 }
 0x195   : > { %977 = vmatmul.f32.gmra.mxu2 %v895_v24 }
 0x198   : > { %v1130_v44 = vpop.trf.xlu1 }
 0x1a0   : > { %v933_v25 = vpop.f32.mrf.mxu2  ;;  %v1131_v51 = vpop.trf.xlu1 }
 0x1a1   : > { %v934_v62 = vadd.f32 %v1969_v47, %v933_v25  ;;  %v1103_v25 = vld [vmem:[%s2663_s12 + $0x28] sm:$0xff] }
 0x1a8   : > { %v936_v26 = vpop.f32.mrf.mxu2  ;;  %v1132_v57 = vpop.trf.xlu1 }
 0x1a9   : > { %v937_v61 = vadd.f32 %v1969_v47, %v936_v26 }
 0x1b0   : > { %v939_v27 = vpop.f32.mrf.mxu2  ;;  %v1133_v63 = vpop.trf.xlu1 }
 0x1b1   : > { %v940_v60 = vadd.f32 %v1969_v47, %v939_v27 }
 0x1b8   : > { %v942_v28 = vpop.f32.mrf.mxu2  ;;  %v1134_v0 = vpop.trf.xlu1 }
 0x1b9   : > { %v943_v59 = vadd.f32 %v1969_v47, %v942_v28  ;;  %v1104_v28 = vld [vmem:[%s2663_s12 + $0x30] sm:$0xff] }
 0x1c0   : > { %v945_v30 = vpop.f32.mrf.mxu2  ;;  %v1135_v1 = vpop.trf.xlu1 }
 0x1c1   : > { %v946_v58 = vadd.f32 %v1969_v47, %v945_v30 }
 0x1c8   : > { %v948_v32 = vpop.f32.mrf.mxu2  ;;  %v1136_v2 = vpop.trf.xlu1 }
 0x1c9   : > { %v949_v56 = vadd.f32 %v1969_v47, %v948_v32 }
 0x1d0   : > { %v951_v33 = vpop.f32.mrf.mxu2  ;;  %v1137_v3 = vpop.trf.xlu1 }
 0x1d1   : > { %v952_v55 = vadd.f32 %v1969_v47, %v951_v33  ;;  %v1105_v33 = vld [vmem:[%s2663_s12 + $0x38] sm:$0xff] }
 0x1d8   : > { %v954_v34 = vpop.f32.mrf.mxu2  ;;  %v1138_v4 = vpop.trf.xlu1 }
 0x1d9   : > { %v955_v54 = vadd.f32 %v1969_v47, %v954_v34 }
 0x1e0   : > { %v957_v35 = vpop.f32.mrf.mxu2  ;;  %v1139_v5 = vpop.trf.xlu1 }
 0x1e1   : > { %v958_v53 = vadd.f32 %v1969_v47, %v957_v35 }
 0x1e8   : > { %v960_v36 = vpop.f32.mrf.mxu2  ;;  %v1140_v6 = vpop.trf.xlu1 }
 0x1e9   : > { %v961_v52 = vadd.f32 %v1969_v47, %v960_v36  ;;  %v1106_v36 = vld [vmem:[%s2663_s12 + $0x40] sm:$0xff] }
 0x1f0   : > { %v963_v37 = vpop.f32.mrf.mxu2  ;;  %v1141_v7 = vpop.trf.xlu1 }
 0x1f1   : > { %v964_v50 = vadd.f32 %v1969_v47, %v963_v37 }
 0x1f8   : > { %v966_v38 = vpop.f32.mrf.mxu2  ;;  %v1142_v8 = vpop.trf.xlu1 }
 0x1f9   : > { %v967_v49 = vadd.f32 %v1969_v47, %v966_v38 }
 0x200   : > { %v969_v39 = vpop.f32.mrf.mxu2  ;;  %v1143_v9 = vpop.trf.xlu1 }
 0x201   : > { %v970_v48 = vadd.f32 %v1969_v47, %v969_v39  ;;  %v1107_v39 = vld [vmem:[%s2663_s12 + $0x48] sm:$0xff] }
 0x208   : > { %v972_v40 = vpop.f32.mrf.mxu2  ;;  %v1144_v10 = vpop.trf.xlu1 }
 0x209   : > { %v973_v46 = vadd.f32 %v1969_v47, %v972_v40 }
 0x210   : > { %v975_v41 = vpop.f32.mrf.mxu2  ;;  %v1145_v11 = vpop.trf.xlu1 }
 0x211   : > { %v976_v45 = vadd.f32 %v1969_v47, %v975_v41 }
 0x218   : > { %v978_v42 = vpop.f32.mrf.mxu2 }
 0x219   : > { %v979_v43 = vadd.f32 %v1969_v47, %v978_v42  ;;  %v1108_v47 = vld [vmem:[%s2663_s12 + $0x50] sm:$0xff] }
 0x21b   : > { %1146 = vmatpush.msra.mxu3 %v979_v43 }
 0x21d   : > { %1147 = vmatpush.msra.mxu3 %v976_v45 }
 0x21f   : > { %1148 = vmatpush.msra.mxu3 %v973_v46 }
 0x221   : > { %1149 = vmatpush.msra.mxu3 %v970_v48  ;;  %v1110_v48 = vld [vmem:[%s2663_s12 + $0x60] sm:$0xff] }
 0x223   : > { %1150 = vmatpush.msra.mxu3 %v967_v49 }
 0x225   : > { %1151 = vmatpush.msra.mxu3 %v964_v50 }
 0x227   : > { %1152 = vmatpush.msra.mxu3 %v961_v52 }
 0x229   : > { %1153 = vmatpush.msra.mxu3 %v958_v53 }
 0x22b   : > { %1154 = vmatpush.msra.mxu3 %v955_v54  ;;  %v1112_v54 = vld [vmem:[%s2663_s12 + $0x70] sm:$0xff] }
 0x22d   : > { %1155 = vmatpush.msra.mxu3 %v952_v55 }
 0x22f   : > { %1156 = vmatpush.msra.mxu3 %v949_v56 }
 0x231   : > { %1157 = vmatpush.msra.mxu3 %v946_v58 }
 0x233   : > { %1158 = vmatpush.msra.mxu3 %v943_v59 }
 0x235   : > { %1159 = vmatpush.msra.mxu3 %v940_v60 }
 0x237   : > { %1160 = vmatpush.msra.mxu3 %v937_v61 }
 0x239   : > { %1161 = vmatpush.msra.mxu3 %v934_v62 }
 0x23a   : > { %1162 = vmatmul.f32.vlgmr.msra.gmra.mxu3 %v1130_v44  ;;  %v1109_v44 = vld [vmem:[%s2663_s12 + $0x58] sm:$0xff] }
 0x242   : > { %1165 = vmatmul.f32.gmra.mxu3 %v1131_v51  ;;  %v1111_v51 = vld [vmem:[%s2663_s12 + $0x68] sm:$0xff] }
 0x24a   : > { %1168 = vmatmul.f32.gmra.mxu3 %v1132_v57  ;;  %v1113_v57 = vld [vmem:[%s2663_s12 + $0x78] sm:$0xff] }
 0x252   : > { %1171 = vmatmul.f32.gmra.mxu3 %v1133_v63 }
 0x25a   : > { %1174 = vmatmul.f32.gmra.mxu3 %v1134_v0 }
 0x262   : > { %1177 = vmatmul.f32.gmra.mxu3 %v1135_v1 }
 0x26a   : > { %1180 = vmatmul.f32.gmra.mxu3 %v1136_v2 }
 0x272   : > { %1183 = vmatmul.f32.gmra.mxu3 %v1137_v3 }
 0x27a   : > { %1186 = vmatmul.f32.gmra.mxu3 %v1138_v4 }
 0x282   : > { %1189 = vmatmul.f32.gmra.mxu3 %v1139_v5 }
 0x28a   : > { %1192 = vmatmul.f32.gmra.mxu3 %v1140_v6 }
 0x292   : > { %1195 = vmatmul.f32.gmra.mxu3 %v1141_v7 }
 0x29a   : > { %1198 = vmatmul.f32.gmra.mxu3 %v1142_v8 }
 0x2a2   : > { %1201 = vmatmul.f32.gmra.mxu3 %v1143_v9 }
 0x2aa   : > { %1204 = vmatmul.f32.gmra.mxu3 %v1144_v10 }
 0x2b2   : > { %1207 = vmatmul.f32.gmra.mxu3 %v1145_v11 }
 0x2bd   : > { %v1163_v13 = vpop.f32.mrf.mxu3 }
 0x2be   : > { %v1211_v14 = vadd.f32 %v1163_v13, %v1098_v12 }
 0x2c0   : > { %1227 = vst [vmem:[%s2663_s12] sm:$0xff] %v1211_v14 }
 0x2c5   : > { %v1166_v16 = vpop.f32.mrf.mxu3 }
 0x2c6   : > { %v1212_v17 = vadd.f32 %v1166_v16, %v1099_v15 }
 0x2c8   : > { %1228 = vst [vmem:[%s2663_s12 + $0x8] sm:$0xff] %v1212_v17 }
 0x2cd   : > { %v1169_v18 = vpop.f32.mrf.mxu3 }
 0x2ce   : > { %v1213_v31 = vadd.f32 %v1169_v18, %v1100_v29 }
 0x2d0   : > { %1229 = vst [vmem:[%s2663_s12 + $0x10] sm:$0xff] %v1213_v31 }
 0x2d5   : > { %v1172_v20 = vpop.f32.mrf.mxu3 }
 0x2d6   : > { %v1214_v21 = vadd.f32 %v1172_v20, %v1101_v19 }
 0x2d8   : > { %1230 = vst [vmem:[%s2663_s12 + $0x18] sm:$0xff] %v1214_v21 }
 0x2dd   : > { %v1175_v23 = vpop.f32.mrf.mxu3 }
 0x2de   : > { %v1215_v24 = vadd.f32 %v1175_v23, %v1102_v22 }
 0x2e0   : > { %1231 = vst [vmem:[%s2663_s12 + $0x20] sm:$0xff] %v1215_v24 }
 0x2e5   : > { %v1178_v26 = vpop.f32.mrf.mxu3 }
 0x2e6   : > { %v1216_v27 = vadd.f32 %v1178_v26, %v1103_v25 }
 0x2e8   : > { %1232 = vst [vmem:[%s2663_s12 + $0x28] sm:$0xff] %v1216_v27 }
 0x2ed   : > { %v1181_v30 = vpop.f32.mrf.mxu3 }
 0x2ee   : > { %v1217_v32 = vadd.f32 %v1181_v30, %v1104_v28 }
 0x2f0   : > { %1233 = vst [vmem:[%s2663_s12 + $0x30] sm:$0xff] %v1217_v32 }
 0x2f5   : > { %v1184_v34 = vpop.f32.mrf.mxu3 }
 0x2f6   : > { %v1218_v35 = vadd.f32 %v1184_v34, %v1105_v33 }
 0x2f8   : > { %1234 = vst [vmem:[%s2663_s12 + $0x38] sm:$0xff] %v1218_v35 }
 0x2fd   : > { %v1187_v37 = vpop.f32.mrf.mxu3 }
 0x2fe   : > { %v1219_v38 = vadd.f32 %v1187_v37, %v1106_v36 }
 0x300   : > { %1235 = vst [vmem:[%s2663_s12 + $0x40] sm:$0xff] %v1219_v38 }
 0x305   : > { %v1190_v40 = vpop.f32.mrf.mxu3 }
 0x306   : > { %v1220_v41 = vadd.f32 %v1190_v40, %v1107_v39 }
 0x308   : > { %1236 = vst [vmem:[%s2663_s12 + $0x48] sm:$0xff] %v1220_v41 }
 0x30d   : > { %v1193_v42 = vpop.f32.mrf.mxu3 }
 0x30e   : > { %v1221_v43 = vadd.f32 %v1193_v42, %v1108_v47 }
 0x310   : > { %1237 = vst [vmem:[%s2663_s12 + $0x50] sm:$0xff] %v1221_v43 }
 0x315   : > { %v1196_v45 = vpop.f32.mrf.mxu3 }
 0x316   : > { %v1222_v46 = vadd.f32 %v1196_v45, %v1109_v44 }
 0x318   : > { %1238 = vst [vmem:[%s2663_s12 + $0x58] sm:$0xff] %v1222_v46 }
 0x31d   : > { %v1199_v49 = vpop.f32.mrf.mxu3 }
 0x31e   : > { %v1223_v50 = vadd.f32 %v1199_v49, %v1110_v48 }
 0x320   : > { %1239 = vst [vmem:[%s2663_s12 + $0x60] sm:$0xff] %v1223_v50 }
 0x325   : > { %v1202_v52 = vpop.f32.mrf.mxu3 }
 0x326   : > { %v1224_v53 = vadd.f32 %v1202_v52, %v1111_v51 }
 0x328   : > { %1240 = vst [vmem:[%s2663_s12 + $0x68] sm:$0xff] %v1224_v53 }
 0x32d   : > { %v1205_v55 = vpop.f32.mrf.mxu3 }
 0x32e   : > { %v1225_v56 = vadd.f32 %v1205_v55, %v1112_v54 }
 0x330   : > { %1241 = vst [vmem:[%s2663_s12 + $0x70] sm:$0xff] %v1225_v56 }
 0x334   : > { %1246 = sbr.rel (%p1756_p1) target bundleno = 1184 (0x4a0), region = 108 }
 0x335   : > { %v1208_v58 = vpop.f32.mrf.mxu3 }
 0x336   : > { %v1226_v59 = vadd.f32 %v1208_v58, %v1113_v57 }
 0x338   : > { %1242 = vst [vmem:[%s2663_s12 + $0x78] sm:$0xff] %v1226_v59 }
 0x339   : > { %v1329_v60 = vld [vmem:[#allocation13 + $0x78] sm:$0xff]  ;;  %v1328_v61 = vld [vmem:[#allocation13 + $0x70] sm:$0xff]  ;;  %v1327_v62 = vld [vmem:[#allocation13 + $0x68] sm:$0xff]  ;;  %v2825_v9 = vstv %s1248_s0 }
 0x33a   : > { %1765 = vmatpush.msra.mxu2 %v1329_v60  ;;  %1334 = vmatpush.msra.mxu0 %v1329_v60  ;;  %v1326_v63 = vld [vmem:[#allocation13 + $0x60] sm:$0xff]  ;;  %v1325_v0 = vld [vmem:[#allocation13 + $0x58] sm:$0xff]  ;;  %v1324_v1 = vld [vmem:[#allocation13 + $0x50] sm:$0xff] }
 0x33b   : > { %v1323_v2 = vld [vmem:[#allocation13 + $0x48] sm:$0xff]  ;;  %v1322_v3 = vld [vmem:[#allocation13 + $0x40] sm:$0xff]  ;;  %v1321_v4 = vld [vmem:[#allocation13 + $0x38] sm:$0xff] }
 0x33c   : > { %1766 = vmatpush.msra.mxu2 %v1328_v61  ;;  %1335 = vmatpush.msra.mxu0 %v1328_v61  ;;  %v1320_v5 = vld [vmem:[#allocation13 + $0x30] sm:$0xff]  ;;  %v1319_v6 = vld [vmem:[#allocation13 + $0x28] sm:$0xff]  ;;  %v1318_v7 = vld [vmem:[#allocation13 + $0x20] sm:$0xff] }
 0x33d   : > { %v1257_v8 = vld [vmem:[%s2634_s29 + $0x40] sm:$0xff]  ;;  %v1317_v11 = vld [vmem:[#allocation13 + $0x18] sm:$0xff]  ;;  %v1316_v12 = vld [vmem:[#allocation13 + $0x10] sm:$0xff] }
 0x33e   : > { %1767 = vmatpush.msra.mxu2 %v1327_v62  ;;  %1336 = vmatpush.msra.mxu0 %v1327_v62  ;;  %v1249_v10 = vld [vmem:[%s2634_s29] sm:$0xff]  ;;  %v1274_v13 = vmul.f32 %v2825_v9, %v1257_v8  ;;  %v1315_v17 = vld [vmem:[#allocation13 + $0x8] sm:$0xff]  ;;  %v1259_v27 = vld [vmem:[%s2634_s29 + $0x50] sm:$0xff] }
 0x33f   : > { %v1266_v14 = vmul.f32 %v2825_v9, %v1249_v10  ;;  %v1290_v15 = vld [vmem:[%s2663_s12 + $0x40] sm:$0xff]  ;;  %v1258_v19 = vld [vmem:[%s2634_s29 + $0x48] sm:$0xff]  ;;  %v1251_v28 = vld [vmem:[%s2634_s29 + $0x10] sm:$0xff]  ;;  %v1276_v30 = vmul.f32 %v2825_v9, %v1259_v27 }
 0x340   : > { %1768 = vmatpush.msra.mxu2 %v1326_v63  ;;  %1337 = vmatpush.msra.mxu0 %v1326_v63  ;;  %v1282_v16 = vld [vmem:[%s2663_s12] sm:$0xff]  ;;  %v1306_v18 = vadd.f32 %v1290_v15, %v1274_v13  ;;  %v1250_v20 = vld [vmem:[%s2634_s29 + $0x8] sm:$0xff]  ;;  %v1275_v21 = vmul.f32 %v2825_v9, %v1258_v19  ;;  %v1268_v32 = vmul.f32 %v2825_v9, %v1251_v28  ;;  %v1292_v33 = vld [vmem:[%s2663_s12 + $0x50] sm:$0xff] }
 0x341   : > { %v1314_v29 = vld [vmem:[#allocation13] sm:$0xff]  ;;  %v1298_v31 = vadd.f32 %v1282_v16, %v1266_v14  ;;  %v1267_v22 = vmul.f32 %v2825_v9, %v1250_v20  ;;  %v1291_v23 = vld [vmem:[%s2663_s12 + $0x48] sm:$0xff]  ;;  %v1284_v34 = vld [vmem:[%s2663_s12 + $0x10] sm:$0xff]  ;;  %v1308_v35 = vadd.f32 %v1292_v33, %v1276_v30 }
 0x342   : > { %1769 = vmatpush.msra.mxu2 %v1325_v0  ;;  %1338 = vmatpush.msra.mxu0 %v1325_v0  ;;  %v1283_v24 = vld [vmem:[%s2663_s12 + $0x8] sm:$0xff]  ;;  %v1307_v25 = vadd.f32 %v1291_v23, %v1275_v21  ;;  %v1300_v36 = vadd.f32 %v1284_v34, %v1268_v32  ;;  %v1260_v37 = vld [vmem:[%s2634_s29 + $0x58] sm:$0xff]  ;;  %v1261_v44 = vld [vmem:[%s2634_s29 + $0x60] sm:$0xff] }
 0x343   : > { %v1299_v26 = vadd.f32 %v1283_v24, %v1267_v22  ;;  %v1252_v38 = vld [vmem:[%s2634_s29 + $0x18] sm:$0xff]  ;;  %v1277_v39 = vmul.f32 %v2825_v9, %v1260_v37  ;;  %v1253_v45 = vld [vmem:[%s2634_s29 + $0x20] sm:$0xff]  ;;  %v1278_v46 = vmul.f32 %v2825_v9, %v1261_v44  ;;  %v1429_v52 = vld [vmem:[#allocation15 + $0x70] sm:$0xff] }
 0x344   : > { %1770 = vmatpush.msra.mxu2 %v1324_v1  ;;  %1339 = vmatpush.msra.mxu0 %v1324_v1  ;;  %v1269_v40 = vmul.f32 %v2825_v9, %v1252_v38  ;;  %v1293_v41 = vld [vmem:[%s2663_s12 + $0x58] sm:$0xff]  ;;  %v1294_v48 = vld [vmem:[%s2663_s12 + $0x60] sm:$0xff]  ;;  %v1270_v49 = vmul.f32 %v2825_v9, %v1253_v45  ;;  %v1428_v53 = vld [vmem:[#allocation15 + $0x68] sm:$0xff] }
 0x345   : > { %v1285_v47 = vld [vmem:[%s2663_s12 + $0x18] sm:$0xff]  ;;  %v1309_v42 = vadd.f32 %v1293_v41, %v1277_v39  ;;  %v1286_v50 = vld [vmem:[%s2663_s12 + $0x20] sm:$0xff]  ;;  %v1310_v54 = vadd.f32 %v1294_v48, %v1278_v46  ;;  %v1262_v56 = vld [vmem:[%s2634_s29 + $0x68] sm:$0xff] }
 0x346   : > { %1771 = vmatpush.msra.mxu2 %v1323_v2  ;;  %1340 = vmatpush.msra.mxu0 %v1323_v2  ;;  %v1301_v43 = vadd.f32 %v1285_v47, %v1269_v40  ;;  %v1430_v51 = vld [vmem:[#allocation15 + $0x78] sm:$0xff]  ;;  %v1302_v55 = vadd.f32 %v1286_v50, %v1270_v49  ;;  %v1254_v57 = vld [vmem:[%s2634_s29 + $0x28] sm:$0xff]  ;;  %v1427_v58 = vld [vmem:[#allocation15 + $0x60] sm:$0xff]  ;;  %v1279_v59 = vmul.f32 %v2825_v9, %v1262_v56 }
 0x347   : > { %1781 = vmatpush.msra.mxu3 %v1430_v51  ;;  %1435 = vmatpush.msra.mxu1 %v1430_v51  ;;  %v1271_v60 = vmul.f32 %v2825_v9, %v1254_v57  ;;  %v1426_v61 = vld [vmem:[#allocation15 + $0x58] sm:$0xff]  ;;  %v1295_v62 = vld [vmem:[%s2663_s12 + $0x68] sm:$0xff]  ;;  %v1425_v0 = vld [vmem:[#allocation15 + $0x50] sm:$0xff] }
 0x348   : > { %1772 = vmatpush.msra.mxu2 %v1322_v3  ;;  %1341 = vmatpush.msra.mxu0 %v1322_v3  ;;  %v1287_v63 = vld [vmem:[%s2663_s12 + $0x28] sm:$0xff]  ;;  %v1311_v1 = vadd.f32 %v1295_v62, %v1279_v59  ;;  %v1422_v10 = vld [vmem:[#allocation15 + $0x38] sm:$0xff]  ;;  %v1421_v13 = vld [vmem:[#allocation15 + $0x30] sm:$0xff] }
 0x349   : > { %1782 = vmatpush.msra.mxu3 %v1429_v52  ;;  %1436 = vmatpush.msra.mxu1 %v1429_v52  ;;  %v1303_v2 = vadd.f32 %v1287_v63, %v1271_v60  ;;  %v1424_v3 = vld [vmem:[#allocation15 + $0x48] sm:$0xff]  ;;  %v1418_v20 = vld [vmem:[#allocation15 + $0x18] sm:$0xff]  ;;  %v1415_v27 = vld [vmem:[#allocation15] sm:$0xff] }
 0x34a   : > { %1773 = vmatpush.msra.mxu2 %v1321_v4  ;;  %1342 = vmatpush.msra.mxu0 %v1321_v4  ;;  %v1263_v4 = vld [vmem:[%s2634_s29 + $0x70] sm:$0xff]  ;;  %v1420_v16 = vld [vmem:[#allocation15 + $0x28] sm:$0xff]  ;;  %v1297_v21 = vld [vmem:[%s2663_s12 + $0x78] sm:$0xff] }
 0x34b   : > { %1783 = vmatpush.msra.mxu3 %v1428_v53  ;;  %1437 = vmatpush.msra.mxu1 %v1428_v53  ;;  %v1289_v22 = vld [vmem:[%s2663_s12 + $0x38] sm:$0xff] }
 0x34c   : > { %1774 = vmatpush.msra.mxu2 %v1320_v5  ;;  %1343 = vmatpush.msra.mxu0 %v1320_v5  ;;  %v1255_v5 = vld [vmem:[%s2634_s29 + $0x30] sm:$0xff] }
 0x34d   : > { %1784 = vmatpush.msra.mxu3 %v1427_v58  ;;  %1438 = vmatpush.msra.mxu1 %v1427_v58  ;;  %v1272_v8 = vmul.f32 %v2825_v9, %v1255_v5 }
 0x34e   : > { %1775 = vmatpush.msra.mxu2 %v1319_v6  ;;  %1344 = vmatpush.msra.mxu0 %v1319_v6  ;;  %v1423_v6 = vld [vmem:[#allocation15 + $0x40] sm:$0xff] }
 0x34f   : > { %1785 = vmatpush.msra.mxu3 %v1426_v61  ;;  %1439 = vmatpush.msra.mxu1 %v1426_v61 }
 0x350   : > { %1776 = vmatpush.msra.mxu2 %v1318_v7  ;;  %1345 = vmatpush.msra.mxu0 %v1318_v7  ;;  %v1280_v7 = vmul.f32 %v2825_v9, %v1263_v4 }
 0x351   : > { %1786 = vmatpush.msra.mxu3 %v1425_v0  ;;  %1440 = vmatpush.msra.mxu1 %v1425_v0 }
 0x352   : > { %1777 = vmatpush.msra.mxu2 %v1317_v11  ;;  %1346 = vmatpush.msra.mxu0 %v1317_v11  ;;  %v1296_v11 = vld [vmem:[%s2663_s12 + $0x70] sm:$0xff] }
 0x353   : > { %1787 = vmatpush.msra.mxu3 %v1424_v3  ;;  %1441 = vmatpush.msra.mxu1 %v1424_v3  ;;  %v1312_v14 = vadd.f32 %v1296_v11, %v1280_v7 }
 0x354   : > { %1778 = vmatpush.msra.mxu2 %v1316_v12  ;;  %1347 = vmatpush.msra.mxu0 %v1316_v12  ;;  %v1288_v12 = vld [vmem:[%s2663_s12 + $0x30] sm:$0xff] }
 0x355   : > { %1788 = vmatpush.msra.mxu3 %v1423_v6  ;;  %1442 = vmatpush.msra.mxu1 %v1423_v6  ;;  %v1304_v15 = vadd.f32 %v1288_v12, %v1272_v8 }
 0x356   : > { %1779 = vmatpush.msra.mxu2 %v1315_v17  ;;  %1348 = vmatpush.msra.mxu0 %v1315_v17  ;;  %v1264_v17 = vld [vmem:[%s2634_s29 + $0x78] sm:$0xff] }
 0x357   : > { %1789 = vmatpush.msra.mxu3 %v1422_v10  ;;  %1443 = vmatpush.msra.mxu1 %v1422_v10 }
 0x358   : > { %1780 = vmatpush.msra.mxu2 %v1314_v29  ;;  %1349 = vmatpush.msra.mxu0 %v1314_v29  ;;  %v1256_v29 = vld [vmem:[%s2634_s29 + $0x38] sm:$0xff] }
 0x359   : > { %1374 = vmatmul.f32.vlgmr.msra.gmra.mxu2 %v1306_v18  ;;  %1350 = vmatmul.f32.vlgmr.msra.gmra.mxu0 %v1298_v31  ;;  %v1419_v18 = vld [vmem:[#allocation15 + $0x20] sm:$0xff]  ;;  %v1281_v31 = vmul.f32 %v2825_v9, %v1264_v17  ;;  %v1273_v19 = vmul.f32 %v2825_v9, %v1256_v29 }
 0x35a   : > { %1790 = vmatpush.msra.mxu3 %v1421_v13  ;;  %1444 = vmatpush.msra.mxu1 %v1421_v13  ;;  %v1970_v9 = vld [vmem:[%s3017_s6] ss:$0 sm:$0xff] }
 0x35b   : > { %v1313_v23 = vadd.f32 %v1297_v21, %v1281_v31  ;;  %v1305_v24 = vadd.f32 %v1289_v22, %v1273_v19 }
 0x35c   : > { %1791 = vmatpush.msra.mxu3 %v1420_v16  ;;  %1445 = vmatpush.msra.mxu1 %v1420_v16 }
 0x35e   : > { %1792 = vmatpush.msra.mxu3 %v1419_v18  ;;  %1446 = vmatpush.msra.mxu1 %v1419_v18 }
 0x360   : > { %1793 = vmatpush.msra.mxu3 %v1418_v20  ;;  %1447 = vmatpush.msra.mxu1 %v1418_v20 }
 0x361   : > { %1377 = vmatmul.f32.gmra.mxu2 %v1307_v25  ;;  %1353 = vmatmul.f32.gmra.mxu0 %v1299_v26  ;;  %v1417_v25 = vld [vmem:[#allocation15 + $0x10] sm:$0xff]  ;;  %v1416_v26 = vld [vmem:[#allocation15 + $0x8] sm:$0xff] }
 0x362   : > { %1794 = vmatpush.msra.mxu3 %v1417_v25  ;;  %1448 = vmatpush.msra.mxu1 %v1417_v25 }
 0x364   : > { %1795 = vmatpush.msra.mxu3 %v1416_v26  ;;  %1449 = vmatpush.msra.mxu1 %v1416_v26 }
 0x366   : > { %1796 = vmatpush.msra.mxu3 %v1415_v27  ;;  %1450 = vmatpush.msra.mxu1 %v1415_v27 }
 0x369   : > { %1380 = vmatmul.f32.gmra.mxu2 %v1308_v35  ;;  %1356 = vmatmul.f32.gmra.mxu0 %v1300_v36 }
 0x371   : > { %1383 = vmatmul.f32.gmra.mxu2 %v1309_v42  ;;  %1359 = vmatmul.f32.gmra.mxu0 %v1301_v43 }
 0x379   : > { %1386 = vmatmul.f32.gmra.mxu2 %v1310_v54  ;;  %1362 = vmatmul.f32.gmra.mxu0 %v1302_v55 }
 0x381   : > { %1389 = vmatmul.f32.gmra.mxu2 %v1311_v1  ;;  %1365 = vmatmul.f32.gmra.mxu0 %v1303_v2 }
 0x389   : > { %1392 = vmatmul.f32.gmra.mxu2 %v1312_v14  ;;  %1368 = vmatmul.f32.gmra.mxu0 %v1304_v15  ;;  %v1971_v15 = vld [vmem:[%s3018_s18] ss:$0 sm:$0xff] }
 0x391   : > { %1395 = vmatmul.f32.gmra.mxu2 %v1313_v23  ;;  %1371 = vmatmul.f32.gmra.mxu0 %v1305_v24 }
 0x3d6   : > { %v1351_v28 = vpop.f32.mrf.mxu0 }
 0x3d7   : > { %v1352_v30 = vadd.f32 %v1970_v9, %v1351_v28 }
 0x3d9   : > { %v1399_v32 = vmax.f32 %v1352_v30, 0.0 }
 0x3db   : > { %1451 = vmatmul.f32.vlgmr.msra.gmra.mxu1 %v1399_v32 }
 0x3dc   : > { %v1375_v33 = vpop.f32.mrf.mxu2 }
 0x3dd   : > { %v1376_v34 = vadd.f32 %v1970_v9, %v1375_v33 }
 0x3de   : > { %v1354_v35 = vpop.f32.mrf.mxu0 }
 0x3df   : > { %v1407_v36 = vmax.f32 %v1376_v34, 0.0  ;;  %v1355_v37 = vadd.f32 %v1970_v9, %v1354_v35 }
 0x3e1   : > { %1475 = vmatmul.f32.vlgmr.msra.gmra.mxu3 %v1407_v36  ;;  %v1400_v38 = vmax.f32 %v1355_v37, 0.0 }
 0x3e3   : > { %1454 = vmatmul.f32.gmra.mxu1 %v1400_v38 }
 0x3e4   : > { %v1378_v39 = vpop.f32.mrf.mxu2 }
 0x3e5   : > { %v1379_v40 = vadd.f32 %v1970_v9, %v1378_v39 }
 0x3e6   : > { %v1357_v41 = vpop.f32.mrf.mxu0 }
 0x3e7   : > { %v1408_v47 = vmax.f32 %v1379_v40, 0.0  ;;  %v1358_v42 = vadd.f32 %v1970_v9, %v1357_v41 }
 0x3e9   : > { %1478 = vmatmul.f32.gmra.mxu3 %v1408_v47  ;;  %v1401_v43 = vmax.f32 %v1358_v42, 0.0 }
 0x3eb   : > { %1457 = vmatmul.f32.gmra.mxu1 %v1401_v43 }
 0x3ec   : > { %v1381_v44 = vpop.f32.mrf.mxu2 }
 0x3ed   : > { %v1382_v45 = vadd.f32 %v1970_v9, %v1381_v44 }
 0x3ee   : > { %v1360_v46 = vpop.f32.mrf.mxu0 }
 0x3ef   : > { %v1409_v48 = vmax.f32 %v1382_v45, 0.0  ;;  %v1361_v49 = vadd.f32 %v1970_v9, %v1360_v46 }
 0x3f1   : > { %1481 = vmatmul.f32.gmra.mxu3 %v1409_v48  ;;  %v1402_v50 = vmax.f32 %v1361_v49, 0.0 }
 0x3f3   : > { %1460 = vmatmul.f32.gmra.mxu1 %v1402_v50 }
 0x3f4   : > { %v1384_v51 = vpop.f32.mrf.mxu2 }
 0x3f5   : > { %v1385_v52 = vadd.f32 %v1970_v9, %v1384_v51 }
 0x3f6   : > { %v1363_v53 = vpop.f32.mrf.mxu0 }
 0x3f7   : > { %v1410_v54 = vmax.f32 %v1385_v52, 0.0  ;;  %v1364_v55 = vadd.f32 %v1970_v9, %v1363_v53 }
 0x3f9   : > { %1484 = vmatmul.f32.gmra.mxu3 %v1410_v54  ;;  %v1403_v56 = vmax.f32 %v1364_v55, 0.0 }
 0x3fb   : > { %1463 = vmatmul.f32.gmra.mxu1 %v1403_v56 }
 0x3fc   : > { %v1387_v57 = vpop.f32.mrf.mxu2 }
 0x3fd   : > { %v1388_v58 = vadd.f32 %v1970_v9, %v1387_v57 }
 0x3fe   : > { %v1366_v59 = vpop.f32.mrf.mxu0 }
 0x3ff   : > { %v1411_v60 = vmax.f32 %v1388_v58, 0.0  ;;  %v1367_v61 = vadd.f32 %v1970_v9, %v1366_v59 }
 0x401   : > { %1487 = vmatmul.f32.gmra.mxu3 %v1411_v60  ;;  %v1404_v62 = vmax.f32 %v1367_v61, 0.0 }
 0x403   : > { %1466 = vmatmul.f32.gmra.mxu1 %v1404_v62 }
 0x404   : > { %v1390_v63 = vpop.f32.mrf.mxu2 }
 0x405   : > { %v1391_v0 = vadd.f32 %v1970_v9, %v1390_v63 }
 0x406   : > { %v1369_v1 = vpop.f32.mrf.mxu0 }
 0x407   : > { %v1412_v2 = vmax.f32 %v1391_v0, 0.0  ;;  %v1370_v3 = vadd.f32 %v1970_v9, %v1369_v1 }
 0x409   : > { %1490 = vmatmul.f32.gmra.mxu3 %v1412_v2  ;;  %v1405_v4 = vmax.f32 %v1370_v3, 0.0 }
 0x40b   : > { %1469 = vmatmul.f32.gmra.mxu1 %v1405_v4 }
 0x40c   : > { %v1393_v5 = vpop.f32.mrf.mxu2 }
 0x40d   : > { %v1394_v6 = vadd.f32 %v1970_v9, %v1393_v5 }
 0x40e   : > { %v1372_v7 = vpop.f32.mrf.mxu0 }
 0x40f   : > { %v1413_v8 = vmax.f32 %v1394_v6, 0.0  ;;  %v1373_v10 = vadd.f32 %v1970_v9, %v1372_v7 }
 0x411   : > { %1493 = vmatmul.f32.gmra.mxu3 %v1413_v8  ;;  %v1406_v11 = vmax.f32 %v1373_v10, 0.0 }
 0x413   : > { %1472 = vmatmul.f32.gmra.mxu1 %v1406_v11 }
 0x414   : > { %v1396_v12 = vpop.f32.mrf.mxu2 }
 0x415   : > { %v1397_v13 = vadd.f32 %v1970_v9, %v1396_v12 }
 0x417   : > { %v1414_v14 = vmax.f32 %v1397_v13, 0.0 }
 0x419   : > { %1496 = vmatmul.f32.gmra.mxu3 %v1414_v14 }
 0x458   : > { %v1452_v16 = vpop.f32.mrf.mxu1 }
 0x459   : > { %v1453_v17 = vadd.f32 %v1971_v15, %v1452_v16 }
 0x45b   : > { %1500 = vst [vmem:[%s2663_s12] sm:$0xff] %v1453_v17 }
 0x460   : > { %v1455_v29 = vpop.f32.mrf.mxu1 }
 0x461   : > { %v1456_v18 = vadd.f32 %v1971_v15, %v1455_v29 }
 0x463   : > { %1501 = vst [vmem:[%s2663_s12 + $0x8] sm:$0xff] %v1456_v18 }
 0x464   : > { %v1476_v31 = vpop.f32.mrf.mxu3 }
 0x465   : > { %v1477_v19 = vadd.f32 %v1971_v15, %v1476_v31 }
 0x467   : > { %1508 = vst [vmem:[%s2663_s12 + $0x40] sm:$0xff] %v1477_v19 }
 0x468   : > { %v1458_v20 = vpop.f32.mrf.mxu1 }
 0x469   : > { %v1459_v21 = vadd.f32 %v1971_v15, %v1458_v20 }
 0x46b   : > { %1502 = vst [vmem:[%s2663_s12 + $0x10] sm:$0xff] %v1459_v21 }
 0x46c   : > { %v1479_v22 = vpop.f32.mrf.mxu3 }
 0x46d   : > { %v1480_v23 = vadd.f32 %v1971_v15, %v1479_v22 }
 0x46f   : > { %1509 = vst [vmem:[%s2663_s12 + $0x48] sm:$0xff] %v1480_v23 }
 0x470   : > { %v1461_v24 = vpop.f32.mrf.mxu1 }
 0x471   : > { %v1462_v25 = vadd.f32 %v1971_v15, %v1461_v24 }
 0x473   : > { %1503 = vst [vmem:[%s2663_s12 + $0x18] sm:$0xff] %v1462_v25 }
 0x474   : > { %v1482_v26 = vpop.f32.mrf.mxu3 }
 0x475   : > { %v1483_v27 = vadd.f32 %v1971_v15, %v1482_v26 }
 0x477   : > { %1510 = vst [vmem:[%s2663_s12 + $0x50] sm:$0xff] %v1483_v27 }
 0x478   : > { %v1464_v9 = vpop.f32.mrf.mxu1 }
 0x479   : > { %v1465_v28 = vadd.f32 %v1971_v15, %v1464_v9 }
 0x47b   : > { %1504 = vst [vmem:[%s2663_s12 + $0x20] sm:$0xff] %v1465_v28 }
 0x47c   : > { %v1485_v30 = vpop.f32.mrf.mxu3 }
 0x47d   : > { %v1486_v32 = vadd.f32 %v1971_v15, %v1485_v30 }
 0x47f   : > { %1511 = vst [vmem:[%s2663_s12 + $0x58] sm:$0xff] %v1486_v32 }
 0x480   : > { %v1467_v33 = vpop.f32.mrf.mxu1 }
 0x481   : > { %v1468_v34 = vadd.f32 %v1971_v15, %v1467_v33 }
 0x483   : > { %1505 = vst [vmem:[%s2663_s12 + $0x28] sm:$0xff] %v1468_v34 }
 0x484   : > { %v1488_v35 = vpop.f32.mrf.mxu3 }
 0x485   : > { %v1489_v36 = vadd.f32 %v1971_v15, %v1488_v35 }
 0x487   : > { %1512 = vst [vmem:[%s2663_s12 + $0x60] sm:$0xff] %v1489_v36 }
 0x488   : > { %v1470_v37 = vpop.f32.mrf.mxu1 }
 0x489   : > { %v1471_v38 = vadd.f32 %v1971_v15, %v1470_v37 }
 0x48b   : > { %1506 = vst [vmem:[%s2663_s12 + $0x30] sm:$0xff] %v1471_v38 }
 0x48c   : > { %v1491_v39 = vpop.f32.mrf.mxu3 }
 0x48d   : > { %v1492_v40 = vadd.f32 %v1971_v15, %v1491_v39 }
 0x48f   : > { %1513 = vst [vmem:[%s2663_s12 + $0x68] sm:$0xff] %v1492_v40 }
 0x490   : > { %v1473_v41 = vpop.f32.mrf.mxu1 }
 0x491   : > { %v1474_v47 = vadd.f32 %v1971_v15, %v1473_v41 }
 0x493   : > { %1507 = vst [vmem:[%s2663_s12 + $0x38] sm:$0xff] %v1474_v47 }
 0x494   : > { %v1494_v42 = vpop.f32.mrf.mxu3 }
 0x495   : > { %v1495_v43 = vadd.f32 %v1971_v15, %v1494_v42 }
 0x497   : > { %1514 = vst [vmem:[%s2663_s12 + $0x70] sm:$0xff] %v1495_v43 }
 0x49c   : > { %v1497_v44 = vpop.f32.mrf.mxu3 }
 0x49d   : > { %v1498_v45 = vadd.f32 %v1971_v15, %v1497_v44 }
 0x49f   : > { %1515 = vst [vmem:[%s2663_s12 + $0x78] sm:$0xff] %v1498_v45 }
 0x4a0 PF: > { %s3020_s25 = sld [smem:[#allocation41_spill]]  ;;  %s1529_s2 = sshll.u32 %s2663_s12, 4  ;;  %s1530_s2 = int_to_ptr.vmem [resolvable:$true] %s1529_s2 }
 0x4a1   : > { %s1517_s27 = scalar_lea.sflag [#allocation6], %s545_s8 }
 0x4a6   : > { %s1528_s22 = scalar_lea.hbm %s3020_s25, %s1739_s11  ;;  %s2202_s29 = scalar_lea.hbm %s3020_s25, 256 }
 0x4a7   : > { %s1531_s10 = sshll.u32 %s1528_s22, 4  ;;  %s1532_s10 = int_to_ptr.hbm [resolvable:$true] %s1531_s10 }
 0x4a8   : > { %s2196_s20 = sshra.s32 %s1532_s10, 4  ;;  %s2197_s20 = int_to_ptr.hbm [resolvable:$true] %s2196_s20 }
 0x4a9   : > { %s2198_s3 = scalar_lea.hbm %s2197_s20, 128  ;;  %p2203_p7 = scmp.lt.s32.totalorder %s2197_s20, %s3020_s25 }
 0x4aa   : > { %p2199_p13 = scmp.ne.s32.totalorder %s2197_s20, %s2198_s3  ;;  %p2204_p9 = scmp.lt.s32.totalorder %s2202_s29, %s2198_s3 }
 0x4ac   : > { %p2200_p4 = pnand %p2199_p13, %p2595_p6  ;;  %p2205_p10 = por %p2204_p9, %p2203_p7 }
 0x4ae   : > { %p2201_p5 = pneg %p2200_p4 }
 0x4b0   : > { %p2206_p8 = pnand %p2205_p10, %p2201_p5 }
 0x4b2   : > { %2209 = shalt.err (!%p2206_p8)
}
 0x4b3   : > { %s2332_s8 = smov 128   ;;  %s2333_s12 = smov 8  }
 0x4b4   : > { %1824 = dma.vmem_to_hbm [thread:$0]  (%p2595_p6), %s1530_s2, 2048, %s1532_s10, %s1517_s27, %s2332_s8, %s2332_s8, %s2333_s12  }
 0x4b5 PF: > { %p1864_p12 = scmp.ge.s32.totalorder %s2320_s24, 2  ;;  %s1546_s11 = sand.u32 1, %s2280_s15  }
 0x4b6   : > { %s1547_s5 = scalar_lea.sflag [#allocation6], %s1546_s11 }
 0x4b7   : > { %p1850_p2 = pnand %p1864_p12, %p2602_p0 }
 0x4b9   : > { %p1851_p3 = pneg %p1850_p2 }
 0x4bb   : > { %2275 = dma.done.wait (%p1851_p3), %s1547_s5, 2048  }
 0x4bc   : > { %2277 = vsyncadd (%p1851_p3), %s1547_s5, 4294965248  ;;  %s36_s24 = sadd.s32 1, %s2320_s24   ;;  %s3021_s14 = sld [smem:[#allocation23_spill]] }
 0x4bd   : > { %p33_p11 = scmp.ge.s32.totalorder %s36_s24, 12   ;;  %s3022_s20 = sld [smem:[#allocation27_spill]] }
 0x4be   : > { %s3023_s0 = sld [smem:[#allocation25_spill]]  ;;  %s3026_s15 = smov %s2284_s16 }
 0x4bf   : > { %s3024_s22 = sld [smem:[#allocation26_spill]]  ;;  %s3027_s16 = smov %s2288_s17 }
 0x4c0   : > { %s3025_s7 = sld [smem:[#allocation28_spill]]  ;;  %s3028_s17 = smov %s2607_s9 }
 0x4c1   : > { %s3029_s18 = smov %s2296_s19  ;;  %s3031_s21 = smov %s2316_s23 }
 0x4c2   : > { %s3030_s19 = smov %s3021_s14  ;;  %35 = sbr.rel (!%p33_p11) target bundleno = 28 (0x1c), region = 164 }
 0x4c6   : > { %s3032_s23 = smov %s3025_s7 }
 0x4c7   :  { %1553 = vsyncpa [#allocation5], 1 }
 0x4c8   :  { %1555 = vsyncpa [#allocation5 + $0x1], 1 }
 0x4c9   :  { %1556 = vsyncpa [#allocation8], 1 }
 0x4ca   :  { %1558 = vsyncpa [#allocation8 + $0x1], 1 }
 0x4cb   :  { %1559 = vsyncpa [#allocation11], 1 }
 0x4cc   :  { %1560 = vsyncpa [#allocation14], 1 }
 0x4cd   :  { %1561 = vsyncpa [#allocation6], 1 }
 0x4ce   :  { %1563 = vsyncpa [#allocation6 + $0x1], 1 }

</bundles_post_ra>
